<compile_context>
chip_gen: v5e
topology: v5e:2x2
jax: 0.10.0
libtpu: 0.0.40
codegen_flags: <defaults>
</compile_context>

<pallas_src>
import functools

import jax
import jax.numpy as jnp
import numpy as np
from jax import lax
from jax.experimental import pallas as pl
from jax.experimental.pallas import tpu as pltpu


def _cja_kernel(x_ref, pv_ref, mask_ref, msel_ref, mselT_ref,
                w1t_ref, b1_ref, wct_ref, bc_ref, wvt_ref, bv_ref,
                o_ref, *, C, V, Bn):
    f32 = jnp.float32
    # constants: hoisted, loaded once per grid step
    pv = pv_ref[...]
    mask = mask_ref[...]
    msel = msel_ref[...]
    mselT = mselT_ref[...]
    w1t = w1t_ref[...]
    b1 = b1_ref[...]
    wct = wct_ref[...]
    bc = bc_ref[...]
    wvt = wvt_ref[...]
    bv = bv_ref[...]
    inv_c = 1.0 / C

    def body(b, carry):
        x = x_ref[b].astype(f32)                                    # (C, TV), lane-dense
        # ---- per-frame statistics (on the lane-dense view) ----
        q = jnp.sum(x, axis=0, keepdims=True)                       # (1, TV)
        m_c = jnp.dot(mask * q, msel,
                      preferred_element_type=f32) * inv_c           # (T, V)  mean over C
        m_v = jnp.dot(x, pv, preferred_element_type=f32)            # (C, T)  mean over V (1/V in pv)

        # z^T = cat([x_c, x_v], spatial)^T -> (V+C, T); transposed form keeps the
        # C-sized tensors un-transposed (only tiny (T,V)/(V,T) transposes remain).
        zT = jnp.concatenate([m_c.T, m_v], axis=0)                  # (V+C, T)

        # fcn: 1x1 conv (BatchNorm folded into w1t/b1) + ReLU
        y1T = jnp.maximum(
            jnp.dot(zT, w1t, preferred_element_type=f32) + b1, 0.0) # (V+C, inner)

        # torch.split(y, [C, V], spatial): first C rows, next V rows of the concat
        # (mixes pooled feature types when C != V -- faithful to the PyTorch module).
        a_cT = y1T[:C, :]                                           # (C, inner)
        a_vT = y1T[C:C + V, :]                                      # (V, inner)

        att_cT = jnp.dot(a_cT, wct, preferred_element_type=f32) + bc                # (C, T)
        att_vT = jax.nn.sigmoid(
            jnp.dot(a_vT, wvt, preferred_element_type=f32) + bv)                    # (V, T)

        # lane-dense scale: scale[c, t*V + v] = att_c[t, c] * att_v[t, v]
        b_diag = jnp.dot(att_vT.T, mselT, preferred_element_type=f32) * mask        # (T, TV)
        scale = jnp.dot(att_cT, b_diag, preferred_element_type=f32)                 # (C, TV)

        o_ref[b] = (x * scale).astype(o_ref.dtype)                  # unmasked, full-lane store
        return carry

    lax.fori_loop(0, Bn, body, 0, unroll=True)


def _vmem_capacity_bytes():
    try:
        info = pltpu.get_tpu_info()
        for name in ("vmem_capacity_bytes", "vmem_bytes", "vmem_size_bytes"):
            cap = getattr(info, name, None)
            if cap:
                return int(cap)
    except Exception:
        pass
    return 64 * 1024 * 1024  # conservative default (v7x per-TensorCore)


def _pad_tile(r, c):
    # padded-to-(8,128) element count of a 2-D f32 tile
    return ((r + 7) // 8 * 8) * ((c + 127) // 128 * 128)


def cja_forward(x, w1, bn_gamma, bn_beta, bn_mean, bn_var, wc, bc, wv, bv, eps=1e-5):
    """x: (N, C, T, V).  w1: (T//2, T), wc/wv: (T, T//2).  Returns (N, C, T, V), dtype of x."""
    N, C, T, V = x.shape
    inner = w1.shape[0]
    TV = T * V
    f32 = jnp.float32
    io_itemsize = jnp.dtype(x.dtype).itemsize

    # TODO(synk): BatchNorm2d is folded in inference (eval) mode using running stats;
    # training-mode batch statistics are not implemented.
    s = (bn_gamma / jnp.sqrt(bn_var + eps)).astype(f32)
    w1t = (w1.astype(f32) * s[:, None]).T                      # (T, inner) folded fcn weight
    b1 = (bn_beta - bn_mean * s).reshape(1, inner).astype(f32)
    wct = wc.astype(f32).T                                     # (inner, T)
    wvt = wv.astype(f32).T                                     # (inner, T)
    bc2 = bc.reshape(1, T).astype(f32)
    bv2 = bv.reshape(1, T).astype(f32)

    # Host-built constant pooling / selection matrices (avoid in-kernel reshapes).
    eyeT = jnp.eye(T, dtype=f32)
    eyeV = jnp.eye(V, dtype=f32)
    pv = jnp.repeat(eyeT, V, axis=0) / V                       # (TV, T): mean over vertices
    mask = jnp.repeat(eyeT, V, axis=1)                         # (T, TV): 1 where col//V == row
    msel = jnp.tile(eyeV, (T, 1))                              # (TV, V): 1 where row%V == col
    mselT = msel.T                                             # (V, TV)

    x_flat = x.reshape(N, C, TV)                               # free reshape, lane-dense last dim

    # ---- generation-aware VMEM budget and samples-per-step (Bn) ----
    const_bytes = 4 * (_pad_tile(TV, T) + _pad_tile(T, TV) + _pad_tile(TV, V) + _pad_tile(V, TV)
                       + _pad_tile(T, inner) + _pad_tile(1, inner)
                       + 2 * _pad_tile(inner, T) + 2 * _pad_tile(1, T))
    # per-sample f32 intermediates (x copy, scale, mask*q, b_diag, zT/y1T, att tiles)
    interm_bytes = 4 * (2 * _pad_tile(C, TV) + 2 * _pad_tile(T, TV)
                        + 2 * _pad_tile(V + C, max(T, inner)) + 4 * _pad_tile(max(C, V), T))

    def est_bytes(bn):
        io = 2 * 2 * bn * _pad_tile(C, TV) * io_itemsize       # x + out blocks, double-buffered
        return io + const_bytes + interm_bytes

    budget = int(0.70 * _vmem_capacity_bytes())                # ~44 MiB on v7x, ~90 MiB on v5e/v6e

    bn_samples = min(8, N)
    if N >= 8:
        bn_samples = min(bn_samples, max(1, N // 4))           # keep >=4 grid steps (v7x 2 TCs)
    while bn_samples > 1 and est_bytes(bn_samples) > budget:
        bn_samples -= 1
    while N % bn_samples:
        bn_samples -= 1
    vmem_limit = int(min(budget, max(16 * 1024 * 1024, 2 * est_bytes(bn_samples))))

    # advisory cost: kernel is memory-dominated (one read + one write of x)
    flops_per_sample = (2 * C * TV * T + 2 * T * TV * V + T * TV
                        + 2 * (V + C) * T * inner + (V + C) * inner
                        + 2 * C * inner * T + 2 * V * inner * T
                        + 2 * T * V * TV + T * TV + 2 * C * T * TV + C * TV)
    cost = pl.CostEstimate(
        flops=int(N * flops_per_sample),
        transcendentals=int(N * T * V),
        bytes_accessed=int(2 * N * C * TV * io_itemsize) + int(const_bytes))

    kernel = functools.partial(_cja_kernel, C=C, V=V, Bn=bn_samples)
    const_shapes = [(TV, T), (T, TV), (TV, V), (V, TV),
                    (T, inner), (1, inner), (inner, T), (1, T), (inner, T), (1, T)]
    operands = (x_flat, pv, mask, msel, mselT, w1t, b1, wct, bc2, wvt, bv2)

    def _call(single_buffer_consts):
        def cspec(shape):
            ndim = len(shape)
            idx = lambda i, _n=ndim: (0,) * _n
            if single_buffer_consts:
                # invariant operands: fetched once, keep a single VMEM buffer
                return pl.BlockSpec(shape, idx, pipeline_mode=pl.Buffered(1))
            return pl.BlockSpec(shape, idx)

        return pl.pallas_call(
            kernel,
            out_shape=jax.ShapeDtypeStruct((N, C, TV), x.dtype),
            grid=(N // bn_samples,),
            in_specs=[pl.BlockSpec((bn_samples, C, TV), lambda i: (i, 0, 0))]
                     + [cspec(s) for s in const_shapes],
            out_specs=pl.BlockSpec((bn_samples, C, TV), lambda i: (i, 0, 0)),
            compiler_params=pltpu.CompilerParams(
                dimension_semantics=("parallel",),
                vmem_limit_bytes=vmem_limit),
            cost_estimate=cost,
        )(*operands)

    try:
        out = _call(True)
    except Exception:
        # pipeline_mode=Buffered(1) unsupported on this jax version -> default buffering
        out = _call(False)

    return out.reshape(N, C, T, V)


def cja_reference(x, w1, bn_gamma, bn_beta, bn_mean, bn_var, wc, bc, wv, bv, eps=1e-5):
    """Pure-JAX reference mirroring the PyTorch forward (BN in eval mode)."""
    N, C, T, V = x.shape
    x = x.astype(jnp.float32)
    x_v = jnp.swapaxes(jnp.mean(x, axis=3, keepdims=True), 1, 2)          # (N, T, C, 1)
    x_c = jnp.mean(x, axis=1, keepdims=True)                              # (N, 1, T, V)
    x_c = jnp.swapaxes(jnp.swapaxes(x_c, 1, 3), 1, 2)                     # (N, T, V, 1)
    z = jnp.concatenate([x_c, x_v], axis=2)                               # (N, T, V+C, 1)
    y = jnp.einsum('jt,ntsk->njsk', w1, z)                                # 1x1 conv, no bias
    y = (y - bn_mean[None, :, None, None]) / jnp.sqrt(bn_var[None, :, None, None] + eps)
    y = y * bn_gamma[None, :, None, None] + bn_beta[None, :, None, None]
    y = jnp.maximum(y, 0.0)
    a_c, a_v = y[:, :, :C, :], y[:, :, C:C + V, :]
    att_c = jnp.einsum('tj,njck->ntck', wc, a_c) + bc[None, :, None, None]
    att_v = jnp.einsum('tj,njvk->ntvk', wv, a_v) + bv[None, :, None, None]
    att_v = jax.nn.sigmoid(jnp.swapaxes(att_v, 2, 3))                     # (N, T, 1, V)
    attn = jnp.swapaxes(att_c * att_v, 1, 2)                              # (N, C, T, V)
    return attn * x


if __name__ == "__main__":
    # module is constructed with channel = T (its Conv2d's run over the time axis)
    N, C, T, V = 8, 32, 8, 16        # C != V exercises the [C, V] split across the concat
    inner = T // 2
    eps = 1e-5

    key = jax.random.PRNGKey(0)
    keys = jax.random.split(key, 10)

    x = jax.random.normal(keys[0], (N, C, T, V), dtype=jnp.float32)

    # parameters (deterministic, matching module __init__ shapes; conv weights squeezed to 2-D)
    w1 = jax.random.normal(keys[1], (inner, T), jnp.float32) * 0.3        # fcn conv, bias=False
    bn_gamma = 1.0 + 0.1 * jax.random.normal(keys[2], (inner,), jnp.float32)
    bn_beta = 0.1 * jax.random.normal(keys[3], (inner,), jnp.float32)
    bn_mean = 0.1 * jax.random.normal(keys[4], (inner,), jnp.float32)
    bn_var = jax.random.uniform(keys[5], (inner,), jnp.float32, 0.5, 1.5)
    wc = jax.random.normal(keys[6], (T, inner), jnp.float32) * 0.3
    bc = 0.1 * jax.random.normal(keys[7], (T,), jnp.float32)
    wv = jax.random.normal(keys[8], (T, inner), jnp.float32) * 0.3
    bv = 0.1 * jax.random.normal(keys[9], (T,), jnp.float32)

    out = cja_forward(x, w1, bn_gamma, bn_beta, bn_mean, bn_var, wc, bc, wv, bv, eps=eps)
    out = jax.block_until_ready(out)

    ref = cja_reference(x, w1, bn_gamma, bn_beta, bn_mean, bn_var, wc, bc, wv, bv, eps=eps)
    np.testing.assert_allclose(np.asarray(out), np.asarray(ref), rtol=1e-4, atol=1e-4)
    assert out.shape == (N, C, T, V) and out.dtype == x.dtype
    print("KERNEL_OK")
</pallas_src>

<mosaic_0001>
module attributes {stable_mosaic.version = 11 : i64} {
  func.func @_cja_kernel(%arg0: i32, %arg1: memref<2x32x128xf32, #tpu.memory_space<vmem>>, %arg2: memref<128x8xf32, #tpu.memory_space<vmem>>, %arg3: memref<8x128xf32, #tpu.memory_space<vmem>>, %arg4: memref<128x16xf32, #tpu.memory_space<vmem>>, %arg5: memref<16x128xf32, #tpu.memory_space<vmem>>, %arg6: memref<8x4xf32, #tpu.memory_space<vmem>>, %arg7: memref<1x4xf32, #tpu.memory_space<vmem>>, %arg8: memref<4x8xf32, #tpu.memory_space<vmem>>, %arg9: memref<1x8xf32, #tpu.memory_space<vmem>>, %arg10: memref<4x8xf32, #tpu.memory_space<vmem>>, %arg11: memref<1x8xf32, #tpu.memory_space<vmem>>, %arg12: memref<2x32x128xf32, #tpu.memory_space<vmem>>) attributes {dimension_semantics = [#tpu.dimension_semantics<parallel>], iteration_bounds = array<i64: 4>, scalar_prefetch = 0 : i64, scratch_operands = 0 : i64, tpu.core_type = #tpu.core_type<tc>, window_params = [{transform_indices = @transform_0, window_bounds = array<i64: 2, 32, 128>}, {pipeline_mode = #tpu.pipeline_mode<synchronous>, transform_indices = @transform_1, window_bounds = array<i64: 128, 8>}, {pipeline_mode = #tpu.pipeline_mode<synchronous>, transform_indices = @transform_2, window_bounds = array<i64: 8, 128>}, {pipeline_mode = #tpu.pipeline_mode<synchronous>, transform_indices = @transform_3, window_bounds = array<i64: 128, 16>}, {pipeline_mode = #tpu.pipeline_mode<synchronous>, transform_indices = @transform_4, window_bounds = array<i64: 16, 128>}, {pipeline_mode = #tpu.pipeline_mode<synchronous>, transform_indices = @transform_5, window_bounds = array<i64: 8, 4>}, {pipeline_mode = #tpu.pipeline_mode<synchronous>, transform_indices = @transform_6, window_bounds = array<i64: 1, 4>}, {pipeline_mode = #tpu.pipeline_mode<synchronous>, transform_indices = @transform_7, window_bounds = array<i64: 4, 8>}, {pipeline_mode = #tpu.pipeline_mode<synchronous>, transform_indices = @transform_8, window_bounds = array<i64: 1, 8>}, {pipeline_mode = #tpu.pipeline_mode<synchronous>, transform_indices = @transform_9, window_bounds = array<i64: 4, 8>}, {pipeline_mode = #tpu.pipeline_mode<synchronous>, transform_indices = @transform_10, window_bounds = array<i64: 1, 8>}, {transform_indices = @transform_11, window_bounds = array<i64: 2, 32, 128>}]} {
    %c0 = arith.constant 0 : index
    %c0_0 = arith.constant 0 : index
    %0 = vector.load %arg2[%c0, %c0_0] : memref<128x8xf32, #tpu.memory_space<vmem>>, vector<128x8xf32>
    %c0_1 = arith.constant 0 : index
    %c0_2 = arith.constant 0 : index
    %1 = vector.load %arg3[%c0_1, %c0_2] : memref<8x128xf32, #tpu.memory_space<vmem>>, vector<8x128xf32>
    %c0_3 = arith.constant 0 : index
    %c0_4 = arith.constant 0 : index
    %2 = vector.load %arg4[%c0_3, %c0_4] : memref<128x16xf32, #tpu.memory_space<vmem>>, vector<128x16xf32>
    %c0_5 = arith.constant 0 : index
    %c0_6 = arith.constant 0 : index
    %3 = vector.load %arg5[%c0_5, %c0_6] : memref<16x128xf32, #tpu.memory_space<vmem>>, vector<16x128xf32>
    %c0_7 = arith.constant 0 : index
    %c0_8 = arith.constant 0 : index
    %4 = vector.load %arg6[%c0_7, %c0_8] : memref<8x4xf32, #tpu.memory_space<vmem>>, vector<8x4xf32>
    %c0_9 = arith.constant 0 : index
    %c0_10 = arith.constant 0 : index
    %5 = vector.load %arg7[%c0_9, %c0_10] : memref<1x4xf32, #tpu.memory_space<vmem>>, vector<1x4xf32>
    %c0_11 = arith.constant 0 : index
    %c0_12 = arith.constant 0 : index
    %6 = vector.load %arg8[%c0_11, %c0_12] : memref<4x8xf32, #tpu.memory_space<vmem>>, vector<4x8xf32>
    %c0_13 = arith.constant 0 : index
    %c0_14 = arith.constant 0 : index
    %7 = vector.load %arg9[%c0_13, %c0_14] : memref<1x8xf32, #tpu.memory_space<vmem>>, vector<1x8xf32>
    %c0_15 = arith.constant 0 : index
    %c0_16 = arith.constant 0 : index
    %8 = vector.load %arg10[%c0_15, %c0_16] : memref<4x8xf32, #tpu.memory_space<vmem>>, vector<4x8xf32>
    %c0_17 = arith.constant 0 : index
    %c0_18 = arith.constant 0 : index
    %9 = vector.load %arg11[%c0_17, %c0_18] : memref<1x8xf32, #tpu.memory_space<vmem>>, vector<1x8xf32>
    %c0_i32 = arith.constant 0 : i32
    %10 = arith.index_cast %c0_i32 : i32 to index
    %c0_19 = arith.constant 0 : index
    %c0_20 = arith.constant 0 : index
    %11 = vector.load %arg1[%10, %c0_19, %c0_20] : memref<2x32x128xf32, #tpu.memory_space<vmem>>, vector<1x32x128xf32>
    %12 = vector.shape_cast %11 : vector<1x32x128xf32> to vector<32x128xf32>
    %cst = arith.constant dense<0.000000e+00> : vector<128xf32>
    %13 = vector.multi_reduction <add>, %12, %cst [0] : vector<32x128xf32> to vector<128xf32>
    %14 = vector.shape_cast %13 : vector<128xf32> to vector<1x128xf32>
    %15 = vector.broadcast %14 : vector<1x128xf32> to vector<8x128xf32>
    %16 = arith.mulf %1, %15 : vector<8x128xf32>
    %cst_21 = arith.constant dense<0.000000e+00> : vector<8x16xf32>
    %17 = tpu.matmul %16, %2, %cst_21 {dimension_numbers = #tpu.dot_dimension_numbers<[1], [0], [0], [1], [0, 0, 1, 1], [], []>} : vector<8x128xf32>, vector<128x16xf32>, vector<8x16xf32> -> vector<8x16xf32>
    %cst_22 = arith.constant 3.125000e-02 : f32
    %18 = vector.broadcast %cst_22 : f32 to vector<8x16xf32>
    %19 = arith.mulf %17, %18 : vector<8x16xf32>
    %cst_23 = arith.constant dense<0.000000e+00> : vector<32x8xf32>
    %20 = tpu.matmul %12, %0, %cst_23 {dimension_numbers = #tpu.dot_dimension_numbers<[1], [0], [0], [1], [0, 0, 1, 1], [], []>} : vector<32x128xf32>, vector<128x8xf32>, vector<32x8xf32> -> vector<32x8xf32>
    %21 = tpu.transpose %19, [1, 0] : vector<8x16xf32> -> vector<16x8xf32>
    %22 = tpu.concatenate %21, %20 in 0 : vector<16x8xf32>, vector<32x8xf32> -> vector<48x8xf32>
    %cst_24 = arith.constant dense<0.000000e+00> : vector<48x4xf32>
    %23 = tpu.matmul %22, %4, %cst_24 {dimension_numbers = #tpu.dot_dimension_numbers<[1], [0], [0], [1], [0, 0, 1, 1], [], []>} : vector<48x8xf32>, vector<8x4xf32>, vector<48x4xf32> -> vector<48x4xf32>
    %24 = vector.broadcast %5 : vector<1x4xf32> to vector<48x4xf32>
    %25 = arith.addf %23, %24 : vector<48x4xf32>
    %cst_25 = arith.constant 0.000000e+00 : f32
    %26 = vector.broadcast %cst_25 : f32 to vector<48x4xf32>
    %27 = arith.maximumf %25, %26 : vector<48x4xf32>
    %28 = vector.extract_strided_slice %27 {offsets = [0, 0], sizes = [32, 4], strides = [1, 1]} : vector<48x4xf32> to vector<32x4xf32>
    %29 = vector.extract_strided_slice %27 {offsets = [32, 0], sizes = [16, 4], strides = [1, 1]} : vector<48x4xf32> to vector<16x4xf32>
    %cst_26 = arith.constant dense<0.000000e+00> : vector<32x8xf32>
    %30 = tpu.matmul %28, %6, %cst_26 {dimension_numbers = #tpu.dot_dimension_numbers<[1], [0], [0], [1], [0, 0, 1, 1], [], []>} : vector<32x4xf32>, vector<4x8xf32>, vector<32x8xf32> -> vector<32x8xf32>
    %31 = vector.broadcast %7 : vector<1x8xf32> to vector<32x8xf32>
    %32 = arith.addf %30, %31 : vector<32x8xf32>
    %cst_27 = arith.constant dense<0.000000e+00> : vector<16x8xf32>
    %33 = tpu.matmul %29, %8, %cst_27 {dimension_numbers = #tpu.dot_dimension_numbers<[1], [0], [0], [1], [0, 0, 1, 1], [], []>} : vector<16x4xf32>, vector<4x8xf32>, vector<16x8xf32> -> vector<16x8xf32>
    %34 = vector.broadcast %9 : vector<1x8xf32> to vector<16x8xf32>
    %35 = arith.addf %33, %34 : vector<16x8xf32>
    %36 = arith.negf %35 : vector<16x8xf32>
    %37 = math.exp %36 : vector<16x8xf32>
    %cst_28 = arith.constant 1.000000e+00 : f32
    %38 = vector.broadcast %cst_28 : f32 to vector<16x8xf32>
    %39 = arith.addf %38, %37 : vector<16x8xf32>
    %40 = arith.divf %38, %39 : vector<16x8xf32>
    %41 = tpu.transpose %40, [1, 0] : vector<16x8xf32> -> vector<8x16xf32>
    %cst_29 = arith.constant dense<0.000000e+00> : vector<8x128xf32>
    %42 = tpu.matmul %41, %3, %cst_29 {dimension_numbers = #tpu.dot_dimension_numbers<[1], [0], [0], [1], [0, 0, 1, 1], [], []>} : vector<8x16xf32>, vector<16x128xf32>, vector<8x128xf32> -> vector<8x128xf32>
    %43 = arith.mulf %42, %1 : vector<8x128xf32>
    %cst_30 = arith.constant dense<0.000000e+00> : vector<32x128xf32>
    %44 = tpu.matmul %32, %43, %cst_30 {dimension_numbers = #tpu.dot_dimension_numbers<[1], [0], [0], [1], [0, 0, 1, 1], [], []>} : vector<32x8xf32>, vector<8x128xf32>, vector<32x128xf32> -> vector<32x128xf32>
    %45 = arith.mulf %12, %44 : vector<32x128xf32>
    %46 = arith.index_cast %c0_i32 : i32 to index
    %c0_31 = arith.constant 0 : index
    %c0_32 = arith.constant 0 : index
    %47 = vector.load %arg12[%46, %c0_31, %c0_32] : memref<2x32x128xf32, #tpu.memory_space<vmem>>, vector<1x32x128xf32>
    %48 = vector.shape_cast %47 : vector<1x32x128xf32> to vector<32x128xf32>
    %49 = vector.shape_cast %45 : vector<32x128xf32> to vector<1x32x128xf32>
    tpu.vector_store %arg12[%46, %c0_31, %c0_32], %49 {strides = array<i32>} : memref<2x32x128xf32, #tpu.memory_space<vmem>>, vector<1x32x128xf32>,
    %c1_i32 = arith.constant 1 : i32
    %50 = arith.index_cast %c1_i32 : i32 to index
    %c0_33 = arith.constant 0 : index
    %c0_34 = arith.constant 0 : index
    %51 = vector.load %arg1[%50, %c0_33, %c0_34] : memref<2x32x128xf32, #tpu.memory_space<vmem>>, vector<1x32x128xf32>
    %52 = vector.shape_cast %51 : vector<1x32x128xf32> to vector<32x128xf32>
    %cst_35 = arith.constant dense<0.000000e+00> : vector<128xf32>
    %53 = vector.multi_reduction <add>, %52, %cst_35 [0] : vector<32x128xf32> to vector<128xf32>
    %54 = vector.shape_cast %53 : vector<128xf32> to vector<1x128xf32>
    %55 = vector.broadcast %54 : vector<1x128xf32> to vector<8x128xf32>
    %56 = arith.mulf %1, %55 : vector<8x128xf32>
    %cst_36 = arith.constant dense<0.000000e+00> : vector<8x16xf32>
    %57 = tpu.matmul %56, %2, %cst_36 {dimension_numbers = #tpu.dot_dimension_numbers<[1], [0], [0], [1], [0, 0, 1, 1], [], []>} : vector<8x128xf32>, vector<128x16xf32>, vector<8x16xf32> -> vector<8x16xf32>
    %cst_37 = arith.constant 3.125000e-02 : f32
    %58 = vector.broadcast %cst_37 : f32 to vector<8x16xf32>
    %59 = arith.mulf %57, %58 : vector<8x16xf32>
    %cst_38 = arith.constant dense<0.000000e+00> : vector<32x8xf32>
    %60 = tpu.matmul %52, %0, %cst_38 {dimension_numbers = #tpu.dot_dimension_numbers<[1], [0], [0], [1], [0, 0, 1, 1], [], []>} : vector<32x128xf32>, vector<128x8xf32>, vector<32x8xf32> -> vector<32x8xf32>
    %61 = tpu.transpose %59, [1, 0] : vector<8x16xf32> -> vector<16x8xf32>
    %62 = tpu.concatenate %61, %60 in 0 : vector<16x8xf32>, vector<32x8xf32> -> vector<48x8xf32>
    %cst_39 = arith.constant dense<0.000000e+00> : vector<48x4xf32>
    %63 = tpu.matmul %62, %4, %cst_39 {dimension_numbers = #tpu.dot_dimension_numbers<[1], [0], [0], [1], [0, 0, 1, 1], [], []>} : vector<48x8xf32>, vector<8x4xf32>, vector<48x4xf32> -> vector<48x4xf32>
    %64 = vector.broadcast %5 : vector<1x4xf32> to vector<48x4xf32>
    %65 = arith.addf %63, %64 : vector<48x4xf32>
    %cst_40 = arith.constant 0.000000e+00 : f32
    %66 = vector.broadcast %cst_40 : f32 to vector<48x4xf32>
    %67 = arith.maximumf %65, %66 : vector<48x4xf32>
    %68 = vector.extract_strided_slice %67 {offsets = [0, 0], sizes = [32, 4], strides = [1, 1]} : vector<48x4xf32> to vector<32x4xf32>
    %69 = vector.extract_strided_slice %67 {offsets = [32, 0], sizes = [16, 4], strides = [1, 1]} : vector<48x4xf32> to vector<16x4xf32>
    %cst_41 = arith.constant dense<0.000000e+00> : vector<32x8xf32>
    %70 = tpu.matmul %68, %6, %cst_41 {dimension_numbers = #tpu.dot_dimension_numbers<[1], [0], [0], [1], [0, 0, 1, 1], [], []>} : vector<32x4xf32>, vector<4x8xf32>, vector<32x8xf32> -> vector<32x8xf32>
    %71 = vector.broadcast %7 : vector<1x8xf32> to vector<32x8xf32>
    %72 = arith.addf %70, %71 : vector<32x8xf32>
    %cst_42 = arith.constant dense<0.000000e+00> : vector<16x8xf32>
    %73 = tpu.matmul %69, %8, %cst_42 {dimension_numbers = #tpu.dot_dimension_numbers<[1], [0], [0], [1], [0, 0, 1, 1], [], []>} : vector<16x4xf32>, vector<4x8xf32>, vector<16x8xf32> -> vector<16x8xf32>
    %74 = vector.broadcast %9 : vector<1x8xf32> to vector<16x8xf32>
    %75 = arith.addf %73, %74 : vector<16x8xf32>
    %76 = arith.negf %75 : vector<16x8xf32>
    %77 = math.exp %76 : vector<16x8xf32>
    %cst_43 = arith.constant 1.000000e+00 : f32
    %78 = vector.broadcast %cst_43 : f32 to vector<16x8xf32>
    %79 = arith.addf %78, %77 : vector<16x8xf32>
    %80 = arith.divf %78, %79 : vector<16x8xf32>
    %81 = tpu.transpose %80, [1, 0] : vector<16x8xf32> -> vector<8x16xf32>
    %cst_44 = arith.constant dense<0.000000e+00> : vector<8x128xf32>
    %82 = tpu.matmul %81, %3, %cst_44 {dimension_numbers = #tpu.dot_dimension_numbers<[1], [0], [0], [1], [0, 0, 1, 1], [], []>} : vector<8x16xf32>, vector<16x128xf32>, vector<8x128xf32> -> vector<8x128xf32>
    %83 = arith.mulf %82, %1 : vector<8x128xf32>
    %cst_45 = arith.constant dense<0.000000e+00> : vector<32x128xf32>
    %84 = tpu.matmul %72, %83, %cst_45 {dimension_numbers = #tpu.dot_dimension_numbers<[1], [0], [0], [1], [0, 0, 1, 1], [], []>} : vector<32x8xf32>, vector<8x128xf32>, vector<32x128xf32> -> vector<32x128xf32>
    %85 = arith.mulf %52, %84 : vector<32x128xf32>
    %86 = arith.index_cast %c1_i32 : i32 to index
    %c0_46 = arith.constant 0 : index
    %c0_47 = arith.constant 0 : index
    %87 = vector.load %arg12[%86, %c0_46, %c0_47] : memref<2x32x128xf32, #tpu.memory_space<vmem>>, vector<1x32x128xf32>
    %88 = vector.shape_cast %87 : vector<1x32x128xf32> to vector<32x128xf32>
    %89 = vector.shape_cast %85 : vector<32x128xf32> to vector<1x32x128xf32>
    tpu.vector_store %arg12[%86, %c0_46, %c0_47], %89 {strides = array<i32>} : memref<2x32x128xf32, #tpu.memory_space<vmem>>, vector<1x32x128xf32>,
    %c2_i32 = arith.constant 2 : i32
    return
  }
  func.func @transform_0(%arg0: i32) -> (i32, i32, i32) {
    %c0_i32 = arith.constant 0 : i32
    %c0_i32_0 = arith.constant 0 : i32
    %c0_i32_1 = arith.constant 0 : i32
    return %arg0, %c0_i32, %c0_i32_0 : i32, i32, i32
  }
  func.func @transform_1(%arg0: i32) -> (i32, i32) {
    %c0_i32 = arith.constant 0 : i32
    %c0_i32_0 = arith.constant 0 : i32
    %c0_i32_1 = arith.constant 0 : i32
    return %c0_i32, %c0_i32_0 : i32, i32
  }
  func.func @transform_2(%arg0: i32) -> (i32, i32) {
    %c0_i32 = arith.constant 0 : i32
    %c0_i32_0 = arith.constant 0 : i32
    %c0_i32_1 = arith.constant 0 : i32
    return %c0_i32, %c0_i32_0 : i32, i32
  }
  func.func @transform_3(%arg0: i32) -> (i32, i32) {
    %c0_i32 = arith.constant 0 : i32
    %c0_i32_0 = arith.constant 0 : i32
    %c0_i32_1 = arith.constant 0 : i32
    return %c0_i32, %c0_i32_0 : i32, i32
  }
  func.func @transform_4(%arg0: i32) -> (i32, i32) {
    %c0_i32 = arith.constant 0 : i32
    %c0_i32_0 = arith.constant 0 : i32
    %c0_i32_1 = arith.constant 0 : i32
    return %c0_i32, %c0_i32_0 : i32, i32
  }
  func.func @transform_5(%arg0: i32) -> (i32, i32) {
    %c0_i32 = arith.constant 0 : i32
    %c0_i32_0 = arith.constant 0 : i32
    %c0_i32_1 = arith.constant 0 : i32
    return %c0_i32, %c0_i32_0 : i32, i32
  }
  func.func @transform_6(%arg0: i32) -> (i32, i32) {
    %c0_i32 = arith.constant 0 : i32
    %c0_i32_0 = arith.constant 0 : i32
    %c0_i32_1 = arith.constant 0 : i32
    return %c0_i32, %c0_i32_0 : i32, i32
  }
  func.func @transform_7(%arg0: i32) -> (i32, i32) {
    %c0_i32 = arith.constant 0 : i32
    %c0_i32_0 = arith.constant 0 : i32
    %c0_i32_1 = arith.constant 0 : i32
    return %c0_i32, %c0_i32_0 : i32, i32
  }
  func.func @transform_8(%arg0: i32) -> (i32, i32) {
    %c0_i32 = arith.constant 0 : i32
    %c0_i32_0 = arith.constant 0 : i32
    %c0_i32_1 = arith.constant 0 : i32
    return %c0_i32, %c0_i32_0 : i32, i32
  }
  func.func @transform_9(%arg0: i32) -> (i32, i32) {
    %c0_i32 = arith.constant 0 : i32
    %c0_i32_0 = arith.constant 0 : i32
    %c0_i32_1 = arith.constant 0 : i32
    return %c0_i32, %c0_i32_0 : i32, i32
  }
  func.func @transform_10(%arg0: i32) -> (i32, i32) {
    %c0_i32 = arith.constant 0 : i32
    %c0_i32_0 = arith.constant 0 : i32
    %c0_i32_1 = arith.constant 0 : i32
    return %c0_i32, %c0_i32_0 : i32, i32
  }
  func.func @transform_11(%arg0: i32) -> (i32, i32, i32) {
    %c0_i32 = arith.constant 0 : i32
    %c0_i32_0 = arith.constant 0 : i32
    %c0_i32_1 = arith.constant 0 : i32
    return %arg0, %c0_i32, %c0_i32_0 : i32, i32, i32
  }
}

module attributes {stable_mosaic.version = 11 : i64} {
  func.func @_cja_kernel(%arg0: i32, %arg1: memref<2x32x128xf32, #tpu.memory_space<vmem>>, %arg2: memref<128x8xf32, #tpu.memory_space<vmem>>, %arg3: memref<8x128xf32, #tpu.memory_space<vmem>>, %arg4: memref<128x16xf32, #tpu.memory_space<vmem>>, %arg5: memref<16x128xf32, #tpu.memory_space<vmem>>, %arg6: memref<8x4xf32, #tpu.memory_space<vmem>>, %arg7: memref<1x4xf32, #tpu.memory_space<vmem>>, %arg8: memref<4x8xf32, #tpu.memory_space<vmem>>, %arg9: memref<1x8xf32, #tpu.memory_space<vmem>>, %arg10: memref<4x8xf32, #tpu.memory_space<vmem>>, %arg11: memref<1x8xf32, #tpu.memory_space<vmem>>, %arg12: memref<2x32x128xf32, #tpu.memory_space<vmem>>) attributes {dimension_semantics = [#tpu.dimension_semantics<parallel>], iteration_bounds = array<i64: 4>, scalar_prefetch = 0 : i64, scratch_operands = 0 : i64, tpu.core_type = #tpu.core_type<tc>, window_params = [{transform_indices = @transform_0, window_bounds = array<i64: 2, 32, 128>}, {pipeline_mode = #tpu.pipeline_mode<synchronous>, transform_indices = @transform_1, window_bounds = array<i64: 128, 8>}, {pipeline_mode = #tpu.pipeline_mode<synchronous>, transform_indices = @transform_2, window_bounds = array<i64: 8, 128>}, {pipeline_mode = #tpu.pipeline_mode<synchronous>, transform_indices = @transform_3, window_bounds = array<i64: 128, 16>}, {pipeline_mode = #tpu.pipeline_mode<synchronous>, transform_indices = @transform_4, window_bounds = array<i64: 16, 128>}, {pipeline_mode = #tpu.pipeline_mode<synchronous>, transform_indices = @transform_5, window_bounds = array<i64: 8, 4>}, {pipeline_mode = #tpu.pipeline_mode<synchronous>, transform_indices = @transform_6, window_bounds = array<i64: 1, 4>}, {pipeline_mode = #tpu.pipeline_mode<synchronous>, transform_indices = @transform_7, window_bounds = array<i64: 4, 8>}, {pipeline_mode = #tpu.pipeline_mode<synchronous>, transform_indices = @transform_8, window_bounds = array<i64: 1, 8>}, {pipeline_mode = #tpu.pipeline_mode<synchronous>, transform_indices = @transform_9, window_bounds = array<i64: 4, 8>}, {pipeline_mode = #tpu.pipeline_mode<synchronous>, transform_indices = @transform_10, window_bounds = array<i64: 1, 8>}, {transform_indices = @transform_11, window_bounds = array<i64: 2, 32, 128>}]} {
    %c0 = arith.constant 0 : index
    %c0_0 = arith.constant 0 : index
    %0 = vector.load %arg2[%c0, %c0_0] : memref<128x8xf32, #tpu.memory_space<vmem>>, vector<128x8xf32>
    %c0_1 = arith.constant 0 : index
    %c0_2 = arith.constant 0 : index
    %1 = vector.load %arg3[%c0_1, %c0_2] : memref<8x128xf32, #tpu.memory_space<vmem>>, vector<8x128xf32>
    %c0_3 = arith.constant 0 : index
    %c0_4 = arith.constant 0 : index
    %2 = vector.load %arg4[%c0_3, %c0_4] : memref<128x16xf32, #tpu.memory_space<vmem>>, vector<128x16xf32>
    %c0_5 = arith.constant 0 : index
    %c0_6 = arith.constant 0 : index
    %3 = vector.load %arg5[%c0_5, %c0_6] : memref<16x128xf32, #tpu.memory_space<vmem>>, vector<16x128xf32>
    %c0_7 = arith.constant 0 : index
    %c0_8 = arith.constant 0 : index
    %4 = vector.load %arg6[%c0_7, %c0_8] : memref<8x4xf32, #tpu.memory_space<vmem>>, vector<8x4xf32>
    %c0_9 = arith.constant 0 : index
    %c0_10 = arith.constant 0 : index
    %5 = vector.load %arg7[%c0_9, %c0_10] : memref<1x4xf32, #tpu.memory_space<vmem>>, vector<1x4xf32>
    %c0_11 = arith.constant 0 : index
    %c0_12 = arith.constant 0 : index
    %6 = vector.load %arg8[%c0_11, %c0_12] : memref<4x8xf32, #tpu.memory_space<vmem>>, vector<4x8xf32>
    %c0_13 = arith.constant 0 : index
    %c0_14 = arith.constant 0 : index
    %7 = vector.load %arg9[%c0_13, %c0_14] : memref<1x8xf32, #tpu.memory_space<vmem>>, vector<1x8xf32>
    %c0_15 = arith.constant 0 : index
    %c0_16 = arith.constant 0 : index
    %8 = vector.load %arg10[%c0_15, %c0_16] : memref<4x8xf32, #tpu.memory_space<vmem>>, vector<4x8xf32>
    %c0_17 = arith.constant 0 : index
    %c0_18 = arith.constant 0 : index
    %9 = vector.load %arg11[%c0_17, %c0_18] : memref<1x8xf32, #tpu.memory_space<vmem>>, vector<1x8xf32>
    %c0_i32 = arith.constant 0 : i32
    %10 = arith.index_cast %c0_i32 : i32 to index
    %c0_19 = arith.constant 0 : index
    %c0_20 = arith.constant 0 : index
    %11 = vector.load %arg1[%10, %c0_19, %c0_20] : memref<2x32x128xf32, #tpu.memory_space<vmem>>, vector<1x32x128xf32>
    %12 = vector.shape_cast %11 : vector<1x32x128xf32> to vector<32x128xf32>
    %cst = arith.constant dense<0.000000e+00> : vector<128xf32>
    %13 = vector.multi_reduction <add>, %12, %cst [0] : vector<32x128xf32> to vector<128xf32>
    %14 = vector.shape_cast %13 : vector<128xf32> to vector<1x128xf32>
    %15 = vector.broadcast %14 : vector<1x128xf32> to vector<8x128xf32>
    %16 = arith.mulf %1, %15 : vector<8x128xf32>
    %cst_21 = arith.constant dense<0.000000e+00> : vector<8x16xf32>
    %17 = tpu.matmul %16, %2, %cst_21 {dimension_numbers = #tpu.dot_dimension_numbers<[1], [0], [0], [1], [0, 0, 1, 1], [], []>} : vector<8x128xf32>, vector<128x16xf32>, vector<8x16xf32> -> vector<8x16xf32>
    %cst_22 = arith.constant 3.125000e-02 : f32
    %18 = vector.broadcast %cst_22 : f32 to vector<8x16xf32>
    %19 = arith.mulf %17, %18 : vector<8x16xf32>
    %cst_23 = arith.constant dense<0.000000e+00> : vector<32x8xf32>
    %20 = tpu.matmul %12, %0, %cst_23 {dimension_numbers = #tpu.dot_dimension_numbers<[1], [0], [0], [1], [0, 0, 1, 1], [], []>} : vector<32x128xf32>, vector<128x8xf32>, vector<32x8xf32> -> vector<32x8xf32>
    %21 = tpu.transpose %19, [1, 0] : vector<8x16xf32> -> vector<16x8xf32>
    %22 = tpu.concatenate %21, %20 in 0 : vector<16x8xf32>, vector<32x8xf32> -> vector<48x8xf32>
    %cst_24 = arith.constant dense<0.000000e+00> : vector<48x4xf32>
    %23 = tpu.matmul %22, %4, %cst_24 {dimension_numbers = #tpu.dot_dimension_numbers<[1], [0], [0], [1], [0, 0, 1, 1], [], []>} : vector<48x8xf32>, vector<8x4xf32>, vector<48x4xf32> -> vector<48x4xf32>
    %24 = vector.broadcast %5 : vector<1x4xf32> to vector<48x4xf32>
    %25 = arith.addf %23, %24 : vector<48x4xf32>
    %cst_25 = arith.constant 0.000000e+00 : f32
    %26 = vector.broadcast %cst_25 : f32 to vector<48x4xf32>
    %27 = arith.maximumf %25, %26 : vector<48x4xf32>
    %28 = vector.extract_strided_slice %27 {offsets = [0, 0], sizes = [32, 4], strides = [1, 1]} : vector<48x4xf32> to vector<32x4xf32>
    %29 = vector.extract_strided_slice %27 {offsets = [32, 0], sizes = [16, 4], strides = [1, 1]} : vector<48x4xf32> to vector<16x4xf32>
    %cst_26 = arith.constant dense<0.000000e+00> : vector<32x8xf32>
    %30 = tpu.matmul %28, %6, %cst_26 {dimension_numbers = #tpu.dot_dimension_numbers<[1], [0], [0], [1], [0, 0, 1, 1], [], []>} : vector<32x4xf32>, vector<4x8xf32>, vector<32x8xf32> -> vector<32x8xf32>
    %31 = vector.broadcast %7 : vector<1x8xf32> to vector<32x8xf32>
    %32 = arith.addf %30, %31 : vector<32x8xf32>
    %cst_27 = arith.constant dense<0.000000e+00> : vector<16x8xf32>
    %33 = tpu.matmul %29, %8, %cst_27 {dimension_numbers = #tpu.dot_dimension_numbers<[1], [0], [0], [1], [0, 0, 1, 1], [], []>} : vector<16x4xf32>, vector<4x8xf32>, vector<16x8xf32> -> vector<16x8xf32>
    %34 = vector.broadcast %9 : vector<1x8xf32> to vector<16x8xf32>
    %35 = arith.addf %33, %34 : vector<16x8xf32>
    %36 = arith.negf %35 : vector<16x8xf32>
    %37 = math.exp %36 : vector<16x8xf32>
    %cst_28 = arith.constant 1.000000e+00 : f32
    %38 = vector.broadcast %cst_28 : f32 to vector<16x8xf32>
    %39 = arith.addf %38, %37 : vector<16x8xf32>
    %40 = arith.divf %38, %39 : vector<16x8xf32>
    %41 = tpu.transpose %40, [1, 0] : vector<16x8xf32> -> vector<8x16xf32>
    %cst_29 = arith.constant dense<0.000000e+00> : vector<8x128xf32>
    %42 = tpu.matmul %41, %3, %cst_29 {dimension_numbers = #tpu.dot_dimension_numbers<[1], [0], [0], [1], [0, 0, 1, 1], [], []>} : vector<8x16xf32>, vector<16x128xf32>, vector<8x128xf32> -> vector<8x128xf32>
    %43 = arith.mulf %42, %1 : vector<8x128xf32>
    %cst_30 = arith.constant dense<0.000000e+00> : vector<32x128xf32>
    %44 = tpu.matmul %32, %43, %cst_30 {dimension_numbers = #tpu.dot_dimension_numbers<[1], [0], [0], [1], [0, 0, 1, 1], [], []>} : vector<32x8xf32>, vector<8x128xf32>, vector<32x128xf32> -> vector<32x128xf32>
    %45 = arith.mulf %12, %44 : vector<32x128xf32>
    %46 = arith.index_cast %c0_i32 : i32 to index
    %c0_31 = arith.constant 0 : index
    %c0_32 = arith.constant 0 : index
    %47 = vector.load %arg12[%46, %c0_31, %c0_32] : memref<2x32x128xf32, #tpu.memory_space<vmem>>, vector<1x32x128xf32>
    %48 = vector.shape_cast %47 : vector<1x32x128xf32> to vector<32x128xf32>
    %49 = vector.shape_cast %45 : vector<32x128xf32> to vector<1x32x128xf32>
    tpu.vector_store %arg12[%46, %c0_31, %c0_32], %49 {strides = array<i32>} : memref<2x32x128xf32, #tpu.memory_space<vmem>>, vector<1x32x128xf32>,
    %c1_i32 = arith.constant 1 : i32
    %50 = arith.index_cast %c1_i32 : i32 to index
    %c0_33 = arith.constant 0 : index
    %c0_34 = arith.constant 0 : index
    %51 = vector.load %arg1[%50, %c0_33, %c0_34] : memref<2x32x128xf32, #tpu.memory_space<vmem>>, vector<1x32x128xf32>
    %52 = vector.shape_cast %51 : vector<1x32x128xf32> to vector<32x128xf32>
    %cst_35 = arith.constant dense<0.000000e+00> : vector<128xf32>
    %53 = vector.multi_reduction <add>, %52, %cst_35 [0] : vector<32x128xf32> to vector<128xf32>
    %54 = vector.shape_cast %53 : vector<128xf32> to vector<1x128xf32>
    %55 = vector.broadcast %54 : vector<1x128xf32> to vector<8x128xf32>
    %56 = arith.mulf %1, %55 : vector<8x128xf32>
    %cst_36 = arith.constant dense<0.000000e+00> : vector<8x16xf32>
    %57 = tpu.matmul %56, %2, %cst_36 {dimension_numbers = #tpu.dot_dimension_numbers<[1], [0], [0], [1], [0, 0, 1, 1], [], []>} : vector<8x128xf32>, vector<128x16xf32>, vector<8x16xf32> -> vector<8x16xf32>
    %cst_37 = arith.constant 3.125000e-02 : f32
    %58 = vector.broadcast %cst_37 : f32 to vector<8x16xf32>
    %59 = arith.mulf %57, %58 : vector<8x16xf32>
    %cst_38 = arith.constant dense<0.000000e+00> : vector<32x8xf32>
    %60 = tpu.matmul %52, %0, %cst_38 {dimension_numbers = #tpu.dot_dimension_numbers<[1], [0], [0], [1], [0, 0, 1, 1], [], []>} : vector<32x128xf32>, vector<128x8xf32>, vector<32x8xf32> -> vector<32x8xf32>
    %61 = tpu.transpose %59, [1, 0] : vector<8x16xf32> -> vector<16x8xf32>
    %62 = tpu.concatenate %61, %60 in 0 : vector<16x8xf32>, vector<32x8xf32> -> vector<48x8xf32>
    %cst_39 = arith.constant dense<0.000000e+00> : vector<48x4xf32>
    %63 = tpu.matmul %62, %4, %cst_39 {dimension_numbers = #tpu.dot_dimension_numbers<[1], [0], [0], [1], [0, 0, 1, 1], [], []>} : vector<48x8xf32>, vector<8x4xf32>, vector<48x4xf32> -> vector<48x4xf32>
    %64 = vector.broadcast %5 : vector<1x4xf32> to vector<48x4xf32>
    %65 = arith.addf %63, %64 : vector<48x4xf32>
    %cst_40 = arith.constant 0.000000e+00 : f32
    %66 = vector.broadcast %cst_40 : f32 to vector<48x4xf32>
    %67 = arith.maximumf %65, %66 : vector<48x4xf32>
    %68 = vector.extract_strided_slice %67 {offsets = [0, 0], sizes = [32, 4], strides = [1, 1]} : vector<48x4xf32> to vector<32x4xf32>
    %69 = vector.extract_strided_slice %67 {offsets = [32, 0], sizes = [16, 4], strides = [1, 1]} : vector<48x4xf32> to vector<16x4xf32>
    %cst_41 = arith.constant dense<0.000000e+00> : vector<32x8xf32>
    %70 = tpu.matmul %68, %6, %cst_41 {dimension_numbers = #tpu.dot_dimension_numbers<[1], [0], [0], [1], [0, 0, 1, 1], [], []>} : vector<32x4xf32>, vector<4x8xf32>, vector<32x8xf32> -> vector<32x8xf32>
    %71 = vector.broadcast %7 : vector<1x8xf32> to vector<32x8xf32>
    %72 = arith.addf %70, %71 : vector<32x8xf32>
    %cst_42 = arith.constant dense<0.000000e+00> : vector<16x8xf32>
    %73 = tpu.matmul %69, %8, %cst_42 {dimension_numbers = #tpu.dot_dimension_numbers<[1], [0], [0], [1], [0, 0, 1, 1], [], []>} : vector<16x4xf32>, vector<4x8xf32>, vector<16x8xf32> -> vector<16x8xf32>
    %74 = vector.broadcast %9 : vector<1x8xf32> to vector<16x8xf32>
    %75 = arith.addf %73, %74 : vector<16x8xf32>
    %76 = arith.negf %75 : vector<16x8xf32>
    %77 = math.exp %76 : vector<16x8xf32>
    %cst_43 = arith.constant 1.000000e+00 : f32
    %78 = vector.broadcast %cst_43 : f32 to vector<16x8xf32>
    %79 = arith.addf %78, %77 : vector<16x8xf32>
    %80 = arith.divf %78, %79 : vector<16x8xf32>
    %81 = tpu.transpose %80, [1, 0] : vector<16x8xf32> -> vector<8x16xf32>
    %cst_44 = arith.constant dense<0.000000e+00> : vector<8x128xf32>
    %82 = tpu.matmul %81, %3, %cst_44 {dimension_numbers = #tpu.dot_dimension_numbers<[1], [0], [0], [1], [0, 0, 1, 1], [], []>} : vector<8x16xf32>, vector<16x128xf32>, vector<8x128xf32> -> vector<8x128xf32>
    %83 = arith.mulf %82, %1 : vector<8x128xf32>
    %cst_45 = arith.constant dense<0.000000e+00> : vector<32x128xf32>
    %84 = tpu.matmul %72, %83, %cst_45 {dimension_numbers = #tpu.dot_dimension_numbers<[1], [0], [0], [1], [0, 0, 1, 1], [], []>} : vector<32x8xf32>, vector<8x128xf32>, vector<32x128xf32> -> vector<32x128xf32>
    %85 = arith.mulf %52, %84 : vector<32x128xf32>
    %86 = arith.index_cast %c1_i32 : i32 to index
    %c0_46 = arith.constant 0 : index
    %c0_47 = arith.constant 0 : index
    %87 = vector.load %arg12[%86, %c0_46, %c0_47] : memref<2x32x128xf32, #tpu.memory_space<vmem>>, vector<1x32x128xf32>
    %88 = vector.shape_cast %87 : vector<1x32x128xf32> to vector<32x128xf32>
    %89 = vector.shape_cast %85 : vector<32x128xf32> to vector<1x32x128xf32>
    tpu.vector_store %arg12[%86, %c0_46, %c0_47], %89 {strides = array<i32>} : memref<2x32x128xf32, #tpu.memory_space<vmem>>, vector<1x32x128xf32>,
    %c2_i32 = arith.constant 2 : i32
    return
  }
  func.func @transform_0(%arg0: i32) -> (i32, i32, i32) {
    %c0_i32 = arith.constant 0 : i32
    %c0_i32_0 = arith.constant 0 : i32
    %c0_i32_1 = arith.constant 0 : i32
    return %arg0, %c0_i32, %c0_i32_0 : i32, i32, i32
  }
  func.func @transform_1(%arg0: i32) -> (i32, i32) {
    %c0_i32 = arith.constant 0 : i32
    %c0_i32_0 = arith.constant 0 : i32
    %c0_i32_1 = arith.constant 0 : i32
    return %c0_i32, %c0_i32_0 : i32, i32
  }
  func.func @transform_2(%arg0: i32) -> (i32, i32) {
    %c0_i32 = arith.constant 0 : i32
    %c0_i32_0 = arith.constant 0 : i32
    %c0_i32_1 = arith.constant 0 : i32
    return %c0_i32, %c0_i32_0 : i32, i32
  }
  func.func @transform_3(%arg0: i32) -> (i32, i32) {
    %c0_i32 = arith.constant 0 : i32
    %c0_i32_0 = arith.constant 0 : i32
    %c0_i32_1 = arith.constant 0 : i32
    return %c0_i32, %c0_i32_0 : i32, i32
  }
  func.func @transform_4(%arg0: i32) -> (i32, i32) {
    %c0_i32 = arith.constant 0 : i32
    %c0_i32_0 = arith.constant 0 : i32
    %c0_i32_1 = arith.constant 0 : i32
    return %c0_i32, %c0_i32_0 : i32, i32
  }
  func.func @transform_5(%arg0: i32) -> (i32, i32) {
    %c0_i32 = arith.constant 0 : i32
    %c0_i32_0 = arith.constant 0 : i32
    %c0_i32_1 = arith.constant 0 : i32
    return %c0_i32, %c0_i32_0 : i32, i32
  }
  func.func @transform_6(%arg0: i32) -> (i32, i32) {
    %c0_i32 = arith.constant 0 : i32
    %c0_i32_0 = arith.constant 0 : i32
    %c0_i32_1 = arith.constant 0 : i32
    return %c0_i32, %c0_i32_0 : i32, i32
  }
  func.func @transform_7(%arg0: i32) -> (i32, i32) {
    %c0_i32 = arith.constant 0 : i32
    %c0_i32_0 = arith.constant 0 : i32
    %c0_i32_1 = arith.constant 0 : i32
    return %c0_i32, %c0_i32_0 : i32, i32
  }
  func.func @transform_8(%arg0: i32) -> (i32, i32) {
    %c0_i32 = arith.constant 0 : i32
    %c0_i32_0 = arith.constant 0 : i32
    %c0_i32_1 = arith.constant 0 : i32
    return %c0_i32, %c0_i32_0 : i32, i32
  }
  func.func @transform_9(%arg0: i32) -> (i32, i32) {
    %c0_i32 = arith.constant 0 : i32
    %c0_i32_0 = arith.constant 0 : i32
    %c0_i32_1 = arith.constant 0 : i32
    return %c0_i32, %c0_i32_0 : i32, i32
  }
  func.func @transform_10(%arg0: i32) -> (i32, i32) {
    %c0_i32 = arith.constant 0 : i32
    %c0_i32_0 = arith.constant 0 : i32
    %c0_i32_1 = arith.constant 0 : i32
    return %c0_i32, %c0_i32_0 : i32, i32
  }
  func.func @transform_11(%arg0: i32) -> (i32, i32, i32) {
    %c0_i32 = arith.constant 0 : i32
    %c0_i32_0 = arith.constant 0 : i32
    %c0_i32_1 = arith.constant 0 : i32
    return %arg0, %c0_i32, %c0_i32_0 : i32, i32, i32
  }
}

</mosaic_0001>

<bundles_post_ra>
// kernel: tpu_custom_call.1
= control target key start
LH: loop header
LB: loop body
LE: loop exit
PB: predicated region body
PF: predicated region fallthrough
CT: control target
= control target key end

     0   :  { %s2176_s0 = inlined_call_operand.vmem [shape: f32[8,32,128], index: 0, kind: input, shape index: {}]   ;;  %s2177_s1 = inlined_call_operand.vmem [shape: f32[128,8], index: 1, kind: input, shape index: {}]   ;;  %s2178_s2 = inlined_call_operand.hbm [shape: f32[8,128], index: 2, kind: input, shape index: {}]   ;;  %s2179_s3 = inlined_call_operand.vmem [shape: f32[128,16], index: 3, kind: input, shape index: {}]   ;;  %s2180_s4 = inlined_call_operand.vmem [shape: f32[16,128], index: 4, kind: input, shape index: {}]   ;;  %s2181_s5 = inlined_call_operand.vmem [shape: f32[8,4], index: 5, kind: input, shape index: {}]   ;;  %s2182_s6 = inlined_call_operand.hbm [shape: f32[1,4], index: 6, kind: input, shape index: {}]   ;;  %s2183_s7 = inlined_call_operand.vmem [shape: f32[4,8], index: 7, kind: input, shape index: {}]   ;;  %s2184_s8 = inlined_call_operand.vmem [shape: f32[1,8], index: 8, kind: input, shape index: {}]   ;;  %s2185_s9 = inlined_call_operand.hbm [shape: f32[4,8], index: 9, kind: input, shape index: {}]   ;;  %s2186_s10 = inlined_call_operand.vmem [shape: f32[1,8], index: 10, kind: input, shape index: {}]   ;;  %s2187_s11 = inlined_call_operand.hbm [shape: f32[8,32,128], index: 11, kind: output, shape index: {}]  }
   0x1   :  { %2189 = sst [smem:[#allocation14_spill]] %s2182_s6 }
   0x2   :  { %16 = vsyncpa [#allocation3], 0 }
   0x3   :  { %17 = vsyncpa [#allocation6], 0 }
   0x4   :  { %18 = vsyncpa [#allocation4], 0 }
   0x5   :  { %20 = vsyncpa [#allocation4 + $0x1], 0  ;;  %s1735_s17 = smov 0   ;;  %s1737_s18 = smov 0  }
   0x6   :  { %s1739_s19 = smov 0   ;;  %s1741_s20 = smov 0  }
   0x7 LB: > { %2190 = sst [smem:[#allocation12_spill]] %s1664_s19  ;;  %s1756_s21 = sadd.s32 4294967295, %s1668_s20   ;;  %s1668_s20 = sphi %s1741_s20, %s2200_s20   ;;  %s1664_s19 = sphi %s1739_s19, %s2197_s19   ;;  %s1660_s18 = sphi %s1737_s18, %s2199_s18   ;;  %s1656_s17 = sphi %s1735_s17, %s2198_s17  }
   0x8   : > { %s1343_s22 = sadd.s32 4294967294, %s1668_s20   ;;  %s1760_s23 = sadd.s32 1, %s1668_s20  }
   0x9   : > { %s269_s24 = sadd.s32 1, %s1664_s19  ;;  %s266_s25 = ssub.s32 %s1668_s20, %s1760_s23 }
   0xa   : > { %p279_p0 = scmp.ne.s32.totalorder %s1664_s19, %s1660_s18  ;;  %p267_p1 = scmp.eq.s32.totalorder %s266_s25, 0 }
   0xb   : > { %p280_p2 = scmp.eq.s32.totalorder %s1756_s21, 3  ;;  %p285_p3 = scmp.ne.s32.totalorder %s1660_s18, %s1656_s17 }
   0xc   : > { %p286_p4 = scmp.eq.s32.totalorder %s1343_s22, 3  ;;  %p1344_p7 = scmp.ge.s32.totalorder %s1668_s20, 1 }
   0xd   : > { %s1771_s26 = scalar_select %p267_p1, %s1664_s19, %s269_s24  }
   0xe   : > { %p1773_p5 = por %p280_p2, %p279_p0  ;;  %p1777_p6 = por %p286_p4, %p285_p3 }
   0xf   : > { %2191 = sst [smem:[#allocation13_spill]] %s1771_s26  ;;  %p293_p8 = scmp.lt.s32.totalorder %s1668_s20, 5 }
  0x10   : > { %p1444_p9 = scmp.eq.s32.totalorder %s1756_s21, 0  ;;  %s2195_s6 = sld [smem:[#allocation14_spill]] }
  0x11   : > { %p1784_p10 = pnand %p1344_p7, %p293_p8  ;;  %s1670_s14 = smov [#allocation5]  }
  0x12   : > { %s331_s15 = sshll.u32 %s1670_s14, 4  ;;  %s308_s24 = sshll.u32 %s2178_s2, 4  ;;  %s332_s15 = int_to_ptr.vmem [resolvable:$true] %s331_s15  ;;  %s309_s24 = int_to_ptr.hbm [resolvable:$true] %s308_s24 }
  0x13   : > { %p1430_p11 = pneg %p1784_p10  ;;  %s347_s19 = sshll.u32 %s2185_s9, 4  ;;  %s348_s19 = int_to_ptr.hbm [resolvable:$true] %s347_s19 }
  0x14   : > { %s1671_s30 = smov [#allocation2]  }
  0x15   : > { %p1431_p12 = pnand %p1444_p9, %p1430_p11  ;;  %s310_s12 = sshll.u32 %s1671_s30, 4  ;;  %s311_s12 = int_to_ptr.vmem [resolvable:$true] %s310_s12 }
  0x16   : > { %s329_s13 = sshll.u32 %s2195_s6, 4  ;;  %s1672_s6 = smov [#allocation7]   ;;  %s330_s13 = int_to_ptr.hbm [resolvable:$true] %s329_s13 }
  0x17   : > { %1436 = dma.hbm_to_vmem [thread:$0]  (!%p1431_p12), %s330_s13, 16, %s332_s15, [#allocation6]  }
  0x18   : > { %1433 = dma.hbm_to_vmem [thread:$0]  (!%p1431_p12), %s309_s24, 128, %s311_s12, [#allocation3]  }
  0x19   : > { %s349_s14 = sshll.u32 %s1672_s6, 4  ;;  %375 = sbr.rel (%p1784_p10) target bundleno = 1474 (0x5c2), region = 64  ;;  %s350_s14 = int_to_ptr.vmem [resolvable:$true] %s349_s14 }
  0x1a   : > { %1439 = dma.hbm_to_vmem [thread:$0]  (!%p1431_p12), %s348_s19, 64, %s350_s14, [#allocation6]  }
  0x1e   : > { %1643 = dma.done.wait (%p1444_p9), [#allocation3], 128  }
  0x1f   : > { %1645 = vsyncadd (%p1444_p9), [#allocation3], 4294967168 }
  0x20   : > { %1647 = dma.done.wait (%p1444_p9), [#allocation6], 80  }
  0x21   : > { %1649 = vsyncadd (%p1444_p9), [#allocation6], 4294967216  ;;  %s1354_s26 = sshll.u32 %s1756_s21, 1  ;;  %v1815_v0 = vld [vmem:[%s2179_s3 + $0x78] sm:$0xff]  ;;  %v1820_v1 = vld [vmem:[%s2179_s3 + $0x70] sm:$0xff]  ;;  %vm575_vm0 = vcmask 64512  }
  0x22   : > { %p428_p13 = scmp.lt.s32.totalorder %s1354_s26, 7  ;;  %490 = vmatpush.msra.mxu0 %v1815_v0  ;;  %v1826_v2 = vld [vmem:[%s2179_s3 + $0x68] sm:$0xff]  ;;  %v1837_v3 = vld [vmem:[%s2179_s3 + $0x60] sm:$0xff]  ;;  %v1846_v5 = vld [vmem:[%s2179_s3 + $0x58] sm:$0xff]  ;;  %vm651_vm1 = vcmask 1043456   ;;  %vm638_vm2 = vcmask 31744  }
  0x23   : > { %v1860_v9 = vld [vmem:[%s2179_s3 + $0x50] sm:$0xff]  ;;  %v1870_v12 = vld [vmem:[%s2179_s3 + $0x48] sm:$0xff]  ;;  %v1877_v14 = vld [vmem:[%s2179_s3 + $0x40] sm:$0xff]  ;;  %vm789_vm11 = vcmask 130048   ;;  %s424_s22 = sand.u32 1, %s1660_s18  }
  0x24   : > { %s2202_s26 = smov (!%p428_p13, %s1354_s26), 7  ;;  %491 = vmatpush.msra.mxu0 %v1820_v1  ;;  %v1883_v16 = vld [vmem:[%s2179_s3 + $0x38] sm:$0xff]  ;;  %v1889_v18 = vld [vmem:[%s2179_s3 + $0x30] sm:$0xff]  ;;  %v1895_v20 = vld [vmem:[%s2179_s3 + $0x28] sm:$0xff]  ;;  %s1353_s24 = sshll.u32 %s424_s22, 6 }
  0x25   : > { %s1413_s6 = sshll.u32 %s2202_s26, 5  ;;  %v1901_v22 = vld [vmem:[%s2179_s3 + $0x20] sm:$0xff]  ;;  %v1907_v24 = vld [vmem:[%s2179_s3 + $0x18] sm:$0xff]  ;;  %v1913_v25 = vld [vmem:[%s2179_s3 + $0x10] sm:$0xff]  ;;  %s2115_s25 = scalar_lea.vmem [#allocation8], %s1353_s24 }
  0x26   : > { %s1831_s30 = scalar_lea.vmem %s2176_s0, %s1413_s6  ;;  %492 = vmatpush.msra.mxu0 %v1826_v2  ;;  %v1916_v27 = vld [vmem:[#allocation2] sm:$0xff]  ;;  %v1921_v28 = vld [vmem:[%s2179_s3 + $0x8] sm:$0xff]  ;;  %v450_v31 = vld [vmem:[%s2177_s1 + $0x78] sm:$0xff]  ;;  %s1247_s19 = sshll.u32 %s2115_s25, 4  ;;  %s1248_s19 = int_to_ptr.vmem [resolvable:$true] %s1247_s19 }
  0x27   : > { %v1841_v4 = vld [vmem:[%s1831_s30] sm:$0xff]  ;;  %v1849_v6 = vld [vmem:[%s1831_s30 + $0x8] sm:$0xff]  ;;  %v1852_v7 = vld [vmem:[%s1831_s30 + $0x10] sm:$0xff]  ;;  %511 = vmatpush.msra.mxu1 %v450_v31  ;;  %s1234_s29 = scalar_lea.sflag [#allocation4], %s424_s22  ;;  %s1618_s24 = scalar_lea.hbm %s2187_s11, 256 }
  0x28   : > { %493 = vmatpush.msra.mxu0 %v1837_v3  ;;  %v480_v8 = vadd.f32 %v1849_v6, %v1841_v4  ;;  %v1863_v10 = vld [vmem:[%s1831_s30 + $0x18] sm:$0xff]  ;;  %v1927_v29 = vld [vmem:[%s2179_s3] sm:$0xff]  ;;  %v449_v32 = vld [vmem:[%s2177_s1 + $0x70] sm:$0xff] }
  0x29   : > { %v448_v33 = vld [vmem:[%s2177_s1 + $0x68] sm:$0xff]  ;;  %512 = vmatpush.msra.mxu1 %v449_v32  ;;  %v447_v34 = vld [vmem:[%s2177_s1 + $0x60] sm:$0xff]  ;;  %v446_v35 = vld [vmem:[%s2177_s1 + $0x58] sm:$0xff] }
  0x2a   : > { %494 = vmatpush.msra.mxu0 %v1846_v5  ;;  %v481_v11 = vadd.f32 %v480_v8, %v1852_v7  ;;  %v445_v36 = vld [vmem:[%s2177_s1 + $0x50] sm:$0xff]  ;;  %v444_v37 = vld [vmem:[%s2177_s1 + $0x48] sm:$0xff]  ;;  %v443_v38 = vld [vmem:[%s2177_s1 + $0x40] sm:$0xff] }
  0x2b   : > { %513 = vmatpush.msra.mxu1 %v448_v33  ;;  %v442_v39 = vld [vmem:[%s2177_s1 + $0x38] sm:$0xff]  ;;  %v441_v40 = vld [vmem:[%s2177_s1 + $0x30] sm:$0xff]  ;;  %v440_v41 = vld [vmem:[%s2177_s1 + $0x28] sm:$0xff] }
  0x2c   : > { %495 = vmatpush.msra.mxu0 %v1860_v9  ;;  %v482_v13 = vadd.f32 %v481_v11, %v1863_v10  ;;  %v439_v42 = vld [vmem:[%s2177_s1 + $0x20] sm:$0xff]  ;;  %v438_v43 = vld [vmem:[%s2177_s1 + $0x18] sm:$0xff]  ;;  %v437_v44 = vld [vmem:[%s2177_s1 + $0x10] sm:$0xff] }
  0x2d   : > { %514 = vmatpush.msra.mxu1 %v447_v34  ;;  %v1977_v45 = vld [vmem:[%s2181_s5] sm:$0xff]  ;;  %v436_v46 = vld [vmem:[%s2177_s1 + $0x8] sm:$0xff]  ;;  %v2019_v56 = vld [vmem:[%s1831_s30 + $0x30] sm:$0xff] }
  0x2e   : > { %496 = vmatpush.msra.mxu0 %v1870_v12  ;;  %v483_v15 = vrot.slane %v482_v13, 4  ;;  %609 = vmatpush.msra.mxu2 %v1977_v45  ;;  %v435_v47 = vld [vmem:[%s2177_s1] sm:$0xff]  ;;  %v2012_v52 = vld [vmem:[%s1831_s30 + $0x28] sm:$0xff]  ;;  %v2024_v58 = vld [vmem:[%s1831_s30 + $0x38] sm:$0xff] }
  0x2f   : > { %515 = vmatpush.msra.mxu1 %v446_v35  ;;  %v2007_v50 = vld [vmem:[%s1831_s30 + $0x20] sm:$0xff]  ;;  %v2036_v11 = vld [vmem:[#allocation5] ss:$0 sm:$0xff]  ;;  %s1415_s30 = sshll.u32 %s1756_s21, 6 }
  0x30   : > { %497 = vmatpush.msra.mxu0 %v1877_v14  ;;  %v484_v17 = vadd.f32 %v483_v15, %v482_v13  ;;  %878 = vmatpush.msrb.mxu2 %v1815_v0  ;;  %v868_v55 = vadd.f32 %v2012_v52, %v2007_v50  ;;  %v474_v15 = vld [vmem:[#allocation7] sm:$0xf]  ;;  %s1246_s26 = scalar_lea.hbm %s2187_s11, %s1415_s30 }
  0x31   : > { %516 = vmatpush.msra.mxu1 %v445_v36  ;;  %s1249_s6 = sshll.u32 %s1246_s26, 4  ;;  %s1250_s6 = int_to_ptr.hbm [resolvable:$true] %s1249_s6 }
  0x32   : > { %498 = vmatpush.msra.mxu0 %v1883_v16  ;;  %v485_v19 = vrot.slane %v484_v17, 2  ;;  %879 = vmatpush.msrb.mxu2 %v1820_v1  ;;  %v869_v57 = vadd.f32 %v2019_v56, %v868_v55  ;;  %s1612_s21 = sshra.s32 %s1250_s6, 4  ;;  %s1613_s21 = int_to_ptr.hbm [resolvable:$true] %s1612_s21 }
  0x33   : > { %517 = vmatpush.msra.mxu1 %v444_v37  ;;  %s1614_s13 = scalar_lea.hbm %s1613_s21, 64  ;;  %p1619_p3 = scmp.lt.s32.totalorder %s1613_s21, %s2187_s11 }
  0x34   : > { %499 = vmatpush.msra.mxu0 %v1889_v18  ;;  %v486_v21 = vadd.f32 %v485_v19, %v484_v17  ;;  %880 = vmatpush.msrb.mxu2 %v1826_v2  ;;  %v870_v59 = vadd.f32 %v2024_v58, %v869_v57  ;;  %p1615_p0 = scmp.ne.s32.totalorder %s1613_s21, %s1614_s13  ;;  %p1620_p4 = scmp.lt.s32.totalorder %s1618_s24, %s1614_s13 }
  0x35   : > { %518 = vmatpush.msra.mxu1 %v443_v38 }
  0x36   : > { %500 = vmatpush.msra.mxu0 %v1895_v20  ;;  %v487_v23 = vrot.slane %v486_v21, 1  ;;  %881 = vmatpush.msrb.mxu2 %v1837_v3  ;;  %v871_v61 = vrot.slane %v870_v59, 4  ;;  %p1616_p1 = pnand %p1615_p0, %p1773_p5  ;;  %p1621_p7 = por %p1620_p4, %p1619_p3 }
  0x37   : > { %519 = vmatpush.msra.mxu1 %v442_v39 }
  0x38   : > { %501 = vmatpush.msra.mxu0 %v1901_v22  ;;  %v488_v26 = vadd.f32 %v487_v23, %v486_v21  ;;  %882 = vmatpush.msrb.mxu2 %v1846_v5  ;;  %v872_v62 = vadd.f32 %v871_v61, %v870_v59  ;;  %p1617_p2 = pneg %p1616_p1 }
  0x39   : > { %520 = vmatpush.msra.mxu1 %v441_v40 }
  0x3a   : > { %502 = vmatpush.msra.mxu0 %v1907_v24  ;;  %v489_v30 = vmul.f32 %v488_v26, %v1916_v27  ;;  %883 = vmatpush.msrb.mxu2 %v1860_v9  ;;  %v873_v0 = vrot.slane %v872_v62, 2  ;;  %v472_v9 = vld [vmem:[%s2183_s7] sm:$0xf]  ;;  %p1622_p8 = pnand %p1621_p7, %p1617_p2 }
  0x3b   : > { %521 = vmatpush.msra.mxu1 %v440_v41  ;;  %1363 = vmatpush.msk.msra.mxu3 %vm651_vm1, %v472_v9 }
  0x3c   : > { %503 = vmatpush.msra.mxu0 %v1913_v25  ;;  %884 = vmatpush.msrb.mxu2 %v1870_v12  ;;  %v874_v1 = vadd.f32 %v873_v0, %v872_v62 }
  0x3d   : > { %522 = vmatpush.msra.mxu1 %v439_v42  ;;  %1368 = vmatpush.msk.msrb.mxu3 %vm651_vm1, %v474_v15 }
  0x3e   : > { %504 = vmatpush.msra.mxu0 %v1921_v28  ;;  %885 = vmatpush.msrb.mxu2 %v1877_v14  ;;  %v875_v2 = vrot.slane %v874_v1, 1 }
  0x3f   : > { %523 = vmatpush.msra.mxu1 %v438_v43 }
  0x40   : > { %505 = vmatpush.msra.mxu0 %v1927_v29  ;;  %886 = vmatpush.msrb.mxu2 %v1883_v16  ;;  %v876_v5 = vadd.f32 %v875_v2, %v874_v1 }
  0x41   : > { %506 = vmatmul.f32.vlgmr.msra.gmra.mxu0 %v489_v30  ;;  %524 = vmatpush.msra.mxu1 %v437_v44 }
  0x42   : > { %887 = vmatpush.msrb.mxu2 %v1889_v18  ;;  %v877_v8 = vmul.f32 %v876_v5, %v1916_v27 }
  0x43   : > { %525 = vmatpush.msra.mxu1 %v436_v46 }
  0x44   : > { %888 = vmatpush.msrb.mxu2 %v1895_v20 }
  0x45   : > { %526 = vmatpush.msra.mxu1 %v435_v47 }
  0x46   : > { %527 = vmatmul.f32.vlgmr.msra.gmra.mxu1 %v1841_v4  ;;  %889 = vmatpush.msrb.mxu2 %v1901_v22 }
  0x47   : > { %899 = vmatpush.msrb.mxu1 %v450_v31 }
  0x48   : > { %890 = vmatpush.msrb.mxu2 %v1907_v24 }
  0x49   : > { %900 = vmatpush.msrb.mxu1 %v449_v32 }
  0x4a   : > { %891 = vmatpush.msrb.mxu2 %v1913_v25 }
  0x4b   : > { %901 = vmatpush.msrb.mxu1 %v448_v33 }
  0x4c   : > { %892 = vmatpush.msrb.mxu2 %v1921_v28 }
  0x4d   : > { %902 = vmatpush.msrb.mxu1 %v447_v34 }
  0x4e   : > { %530 = vmatmul.f32.gmra.mxu1 %v1849_v6  ;;  %893 = vmatpush.msrb.mxu2 %v1927_v29 }
  0x4f   : > { %903 = vmatpush.msrb.mxu1 %v446_v35 }
  0x51   : > { %904 = vmatpush.msrb.mxu1 %v445_v36 }
  0x53   : > { %905 = vmatpush.msrb.mxu1 %v444_v37 }
  0x55   : > { %906 = vmatpush.msrb.mxu1 %v443_v38  ;;  %v2062_v38 = vld [vmem:[%s2186_s10] ss:$0 sm:$0xff] }
  0x56   : > { %533 = vmatmul.f32.gmra.mxu1 %v1852_v7 }
  0x57   : > { %907 = vmatpush.msrb.mxu1 %v442_v39 }
  0x59   : > { %908 = vmatpush.msrb.mxu1 %v441_v40 }
  0x5b   : > { %909 = vmatpush.msrb.mxu1 %v440_v41 }
  0x5d   : > { %910 = vmatpush.msrb.mxu1 %v439_v42 }
  0x5e   : > { %536 = vmatmul.f32.gmra.mxu1 %v1863_v10 }
  0x5f   : > { %911 = vmatpush.msrb.mxu1 %v438_v43 }
  0x61   : > { %912 = vmatpush.msrb.mxu1 %v437_v44 }
  0x63   : > { %913 = vmatpush.msrb.mxu1 %v436_v46 }
  0x65   : > { %914 = vmatpush.msrb.mxu1 %v435_v47 }
  0x66   : > { %915 = vmatmul.f32.vlgmr.msrb.gmra.mxu1 %v2007_v50 }
  0x67   : > { %1393 = vmatpush.msk.msra.mxu1 %vm651_vm1, %v474_v15 }
  0x6e   : > { %918 = vmatmul.f32.gmra.mxu1 %v2012_v52 }
  0x76   : > { %921 = vmatmul.f32.gmra.mxu1 %v2019_v56 }
  0x7e   : > { %924 = vmatmul.f32.gmra.mxu1 %v2024_v58 }
  0xbe   : > { %v507_v48 = vpop.f32.mrf.mxu0 }
  0xbf   : > { %v510_v49 = vmul.f32 0.03125, %v507_v48 }
  0xc1   : > { %540 = vxpose.xlu0.b32.start.end [1/1] (short) (narrow) %v510_v49, 16 }
  0xc3   : > { %v528_v54 = vpop.f32.mrf.mxu1 }
  0xcb   : > { %v531_v60 = vpop.f32.mrf.mxu1 }
  0xd3   : > { %v534_v63 = vpop.f32.mrf.mxu1 }
  0xdb   : > { %v537_v3 = vpop.f32.mrf.mxu1 }
 0x165   : > { %v556_v51 = vpop.trf.xlu0 }
 0x166   : > { %1357 = vmatmul.msk.f32.vlgmr.msra.gmra.mxu2 %vm575_vm0, %v556_v51 }
 0x167   : > { %1388 = vmatpush.msk.msra.mxu2 %vm651_vm1, %v472_v9 }
 0x16d   : > { %v557_v53 = vpop.trf.xlu0 }
 0x16e   : > { %1358 = vmatmul.msk.f32.gmra.mxu2 %vm575_vm0, %v557_v53 }
 0x176   : > { %1359 = vmatmul.msk.f32.gmra.mxu2 %vm575_vm0, %v528_v54 }
 0x17e   : > { %1360 = vmatmul.msk.f32.gmra.mxu2 %vm575_vm0, %v531_v60 }
 0x186   : > { %1361 = vmatmul.msk.f32.gmra.mxu2 %vm575_vm0, %v534_v63 }
 0x18e   : > { %1362 = vmatmul.msk.f32.gmra.mxu2 %vm575_vm0, %v537_v3 }
 0x196   : > { %894 = vmatmul.f32.vlgmr.msrb.gmra.mxu2 %v877_v8 }
 0x1e9   : > { %v611_v12 = vpop.f32.mrf.mxu2 }
 0x1ea   : > { %v612_v13 = vadd.f32 %v2036_v11, %v611_v12 }
 0x1ec   : > { %v629_v14 = vmax.f32 %v612_v13, 0.0 }
 0x1ee   : > { %1364 = vmatmul.msk.f32.vlgmr.msra.gmra.mxu3 %vm638_vm2, %v629_v14 }
 0x1ef   : > { %993 = vmatpush.msra.mxu3 %v1977_v45 }
 0x1f1   : > { %v614_v16 = vpop.f32.mrf.mxu2 }
 0x1f2   : > { %v615_v17 = vadd.f32 %v2036_v11, %v614_v16  ;;  %v916_v16 = vpop.f32.mrf.mxu1 }
 0x1f4   : > { %v630_v18 = vmax.f32 %v615_v17, 0.0 }
 0x1f6   : > { %1365 = vmatmul.msk.f32.gmra.mxu3 %vm638_vm2, %v630_v18 }
 0x1f9   : > { %v617_v19 = vpop.f32.mrf.mxu2 }
 0x1fa   : > { %v618_v20 = vadd.f32 %v2036_v11, %v617_v19  ;;  %v919_v17 = vpop.f32.mrf.mxu1 }
 0x1fc   : > { %v631_v21 = vmax.f32 %v618_v20, 0.0  ;;  %v469_v20 = vld [vmem:[%s2180_s4 + $0x8] sm:$0xff] }
 0x1fd   : > { %807 = vmatpush.msrb.mxu0 %v469_v20  ;;  %1176 = vmatpush.msrb.mxu2 %v469_v20 }
 0x1fe   : > { %1366 = vmatmul.msk.f32.gmra.mxu3 %vm638_vm2, %v631_v21  ;;  %v468_v21 = vld [vmem:[%s2180_s4] sm:$0xff] }
 0x1ff   : > { %808 = vmatpush.msrb.mxu0 %v468_v21  ;;  %1177 = vmatpush.msrb.mxu2 %v468_v21 }
 0x201   : > { %v620_v22 = vpop.f32.mrf.mxu2 }
 0x202   : > { %v621_v23 = vadd.f32 %v2036_v11, %v620_v22  ;;  %v922_v18 = vpop.f32.mrf.mxu1 }
 0x204   : > { %v632_v24 = vmax.f32 %v621_v23, 0.0 }
 0x206   : > { %1367 = vmatmul.msk.f32.gmra.mxu3 %vm638_vm2, %v632_v24 }
 0x209   : > { %v623_v25 = vpop.f32.mrf.mxu2 }
 0x20a   : > { %v624_v26 = vadd.f32 %v2036_v11, %v623_v25  ;;  %v925_v19 = vpop.f32.mrf.mxu1 }
 0x20c   : > { %v633_v28 = vmax.f32 %v624_v26, 0.0 }
 0x20e   : > { %1369 = vmatmul.msk.f32.vlgmr.msrb.gmra.mxu3 %vm638_vm2, %v633_v28 }
 0x211   : > { %v626_v29 = vpop.f32.mrf.mxu2 }
 0x212   : > { %v627_v30 = vadd.f32 %v2036_v11, %v626_v29 }
 0x214   : > { %v634_v31 = vmax.f32 %v627_v30, 0.0 }
 0x216   : > { %1370 = vmatmul.msk.f32.gmra.mxu3 %vm638_vm2, %v634_v31 }
 0x219   : > { %v895_v32 = vpop.f32.mrf.mxu2 }
 0x21a   : > { %v898_v33 = vmul.f32 0.03125, %v895_v32 }
 0x21c   : > { %928 = vxpose.xlu0.b32.start.end [1/1] (short) (narrow) %v898_v33, 16 }
 0x271   : > { %v2051_v34 = vpop.f32.mrf.mxu3 }
 0x279   : > { %v2053_v35 = vpop.f32.mrf.mxu3 }
 0x281   : > { %v2055_v36 = vpop.f32.mrf.mxu3 }
 0x289   : > { %v2057_v37 = vpop.f32.mrf.mxu3 }
 0x291   : > { %v713_v39 = vpop.f32.mrf.mxu3 }
 0x292   : > { %v714_v40 = vadd.f32 %v2062_v38, %v713_v39 }
 0x294   : > { %v1371_v41 = vmul.f32 -1.442695, %v714_v40 }
 0x296   : > { %1492 = vpow2.f32 %v1371_v41 }
 0x299   : > { %v716_v42 = vpop.f32.mrf.mxu3 }
 0x29a   : > { %v717_v43 = vadd.f32 %v2062_v38, %v716_v42 }
 0x29c   : > { %v1493_v44 = vpop.eup %1492  ;;  %v1372_v45 = vmul.f32 -1.442695, %v717_v43 }
 0x29d   : > { %v725_v46 = vadd.f32 1.0, %v1493_v44 }
 0x29e   : > { %1494 = vpow2.f32 %v1372_v45 }
 0x29f   : > { %1496 = vrcp.f32 %v725_v46  ;;  %v738_v54 = vand.u32 2147483648, %v725_v46  ;;  %v736_v57 = vand.u32 2147483647, %v725_v46  ;;  %vm732_vm4 = vweird.f32 %v725_v46 }
 0x2a1   : > { %v739_v61 = vor.u32 1.1754944e-38, %v738_v54  ;;  %vm737_vm6 = vcmp.eq.f32.partialorder %v736_v57, 8.507059e+37 }
 0x2a4   : > { %v1495_v47 = vpop.eup %1494 }
 0x2a5   : > { %v1497_v48 = vpop.eup %1496  ;;  %v726_v49 = vadd.f32 1.0, %v1495_v47  ;;  %v2094_v47 = vld [vmem:[%s2184_s8] ss:$0 sm:$0xff] }
 0x2a6   : > { %v728_v51 = vmul.f32 %v1497_v48, %v725_v46  ;;  %vm733_vm3 = vweird.f32 %v1497_v48 }
 0x2a7   : > { %1498 = vrcp.f32 %v726_v49  ;;  %vm734_vm5 = vmor %vm732_vm4, %vm733_vm3  ;;  %v753_v2 = vand.u32 2147483648, %v726_v49  ;;  %v751_v5 = vand.u32 2147483647, %v726_v49  ;;  %vm747_vm8 = vweird.f32 %v726_v49 }
 0x2a8   : > { %v729_v53 = vsub.f32 1.0, %v728_v51  ;;  %v673_v51 = vadd.f32 %v2094_v47, %v2051_v34  ;;  %v682_v34 = vadd.f32 %v2094_v47, %v2057_v37 }
 0x2a9   : > { %v754_v9 = vor.u32 1.1754944e-38, %v753_v2  ;;  %vm752_vm10 = vcmp.eq.f32.partialorder %v751_v5, 8.507059e+37 }
 0x2aa   : > { %v730_v55 = vmul.f32 %v1497_v48, %v729_v53  ;;  %v679_v53 = vadd.f32 %v2094_v47, %v2055_v36 }
 0x2ac   : > { %v731_v59 = vadd.f32 %v1497_v48, %v730_v55 }
 0x2ad   : > { %v1499_v60 = vpop.eup %1498 }
 0x2ae   : > { %v735_v62 = vsel %vm734_vm5, %v1497_v48, %v731_v59  ;;  %v743_v63 = vmul.f32 %v1499_v60, %v726_v49  ;;  %vm748_vm7 = vweird.f32 %v1499_v60 }
 0x2af   : > { %v740_v0 = vsel %vm737_vm6, %v739_v61, %v735_v62  ;;  %vm749_vm9 = vmor %vm747_vm8, %vm748_vm7 }
 0x2b0   : > { %757 = vxpose.xlu1.b32.start [1/2] (short) (narrow) %v740_v0, 8  ;;  %v744_v1 = vsub.f32 1.0, %v743_v63 }
 0x2b2   : > { %v745_v3 = vmul.f32 %v1499_v60, %v744_v1 }
 0x2b4   : > { %v746_v8 = vadd.f32 %v1499_v60, %v745_v3 }
 0x2b6   : > { %v750_v12 = vsel %vm749_vm9, %v1499_v60, %v746_v8 }
 0x2b7   : > { %v755_v13 = vsel %vm752_vm10, %v754_v9, %v750_v12 }
 0x2b8   : > { %758 = vxpose.xlu1.b32.end [2/2] (short) (narrow) %v755_v13, 8 }
 0x2c0   : > { %v944_v14 = vpop.trf.xlu0 }
 0x2c1   : > { %1382 = vmatmul.msk.f32.vlgmr.msra.gmra.mxu3 %vm575_vm0, %v944_v14 }
 0x2c8   : > { %v945_v15 = vpop.trf.xlu0 }
 0x2c9   : > { %1383 = vmatmul.msk.f32.gmra.mxu3 %vm575_vm0, %v945_v15 }
 0x2d1   : > { %1384 = vmatmul.msk.f32.gmra.mxu3 %vm575_vm0, %v916_v16 }
 0x2d9   : > { %1385 = vmatmul.msk.f32.gmra.mxu3 %vm575_vm0, %v919_v17 }
 0x2e1   : > { %1386 = vmatmul.msk.f32.gmra.mxu3 %vm575_vm0, %v922_v18 }
 0x2e9   : > { %1387 = vmatmul.msk.f32.gmra.mxu3 %vm575_vm0, %v925_v19 }
 0x344   : > { %v995_v22 = vpop.f32.mrf.mxu3 }
 0x345   : > { %v996_v23 = vadd.f32 %v2036_v11, %v995_v22 }
 0x347   : > { %v1013_v24 = vmax.f32 %v996_v23, 0.0 }
 0x349   : > { %1389 = vmatmul.msk.f32.vlgmr.msra.gmra.mxu2 %vm638_vm2, %v1013_v24 }
 0x34c   : > { %v998_v25 = vpop.f32.mrf.mxu3 }
 0x34d   : > { %v999_v26 = vadd.f32 %v2036_v11, %v998_v25 }
 0x34f   : > { %v1014_v28 = vmax.f32 %v999_v26, 0.0 }
 0x351   : > { %1390 = vmatmul.msk.f32.gmra.mxu2 %vm638_vm2, %v1014_v28 }
 0x354   : > { %v1001_v29 = vpop.f32.mrf.mxu3  ;;  %v773_v30 = vpop.trf.xlu1 }
 0x355   : > { %v1002_v31 = vadd.f32 %v2036_v11, %v1001_v29  ;;  %1373 = vmatmul.msk.f32.vlgmr.msrb.gmra.mxu0 %vm789_vm11, %v773_v30 }
 0x357   : > { %v1015_v32 = vmax.f32 %v1002_v31, 0.0 }
 0x359   : > { %1391 = vmatmul.msk.f32.gmra.mxu2 %vm638_vm2, %v1015_v32 }
 0x35c   : > { %v1004_v33 = vpop.f32.mrf.mxu3 }
 0x35d   : > { %v1005_v39 = vadd.f32 %v2036_v11, %v1004_v33 }
 0x35f   : > { %v1016_v40 = vmax.f32 %v1005_v39, 0.0 }
 0x361   : > { %1392 = vmatmul.msk.f32.gmra.mxu2 %vm638_vm2, %v1016_v40 }
 0x364   : > { %v1007_v41 = vpop.f32.mrf.mxu3 }
 0x365   : > { %v1008_v42 = vadd.f32 %v2036_v11, %v1007_v41 }
 0x367   : > { %v1017_v43 = vmax.f32 %v1008_v42, 0.0 }
 0x369   : > { %1394 = vmatmul.msk.f32.vlgmr.msra.gmra.mxu1 %vm638_vm2, %v1017_v43 }
 0x36c   : > { %v1010_v44 = vpop.f32.mrf.mxu3 }
 0x36d   : > { %v1011_v45 = vadd.f32 %v2036_v11, %v1010_v44  ;;  %v676_v11 = vadd.f32 %v2094_v47, %v2053_v35 }
 0x36f   : > { %v1018_v46 = vmax.f32 %v1011_v45, 0.0 }
 0x371   : > { %1395 = vmatmul.msk.f32.gmra.mxu1 %vm638_vm2, %v1018_v46 }
 0x3cc   : > { %v1048_v32 = vpop.f32.mrf.mxu2 }
 0x3d2   : > { %v810_v48 = vpop.f32.mrf.mxu0 }
 0x3d3   : > { %v813_v49 = vmul.f32 %v810_v48, %v1916_v27 }
 0x3d4   : > { %v1051_v33 = vpop.f32.mrf.mxu2 }
 0x3d5   : > { %841 = vmatpush.msra.mxu0 %v813_v49 }
 0x3d6   : > { %1374 = vmatmul.msk.f32.vlgmr.msra.gmra.mxu0 %vm575_vm0, %v673_v51 }
 0x3dc   : > { %v1054_v39 = vpop.f32.mrf.mxu2 }
 0x3dd   : > { %v1055_v42 = vadd.f32 %v2094_v47, %v1054_v39 }
 0x3de   : > { %1375 = vmatmul.msk.f32.gmra.mxu0 %vm575_vm0, %v676_v11 }
 0x3e4   : > { %v1057_v40 = vpop.f32.mrf.mxu2 }
 0x3e5   : > { %v1058_v43 = vadd.f32 %v2094_v47, %v1057_v40 }
 0x3e6   : > { %1376 = vmatmul.msk.f32.gmra.mxu0 %vm575_vm0, %v679_v53  ;;  %v1083_v54 = vpop.f32.mrf.mxu1 }
 0x3e7   : > { %v1084_v55 = vadd.f32 %v2062_v38, %v1083_v54 }
 0x3e9   : > { %v1396_v57 = vmul.f32 -1.442695, %v1084_v55 }
 0x3eb   : > { %1500 = vpow2.f32 %v1396_v57 }
 0x3ee   : > { %1377 = vmatmul.msk.f32.gmra.mxu0 %vm575_vm0, %v682_v34  ;;  %v1086_v59 = vpop.f32.mrf.mxu1 }
 0x3ef   : > { %v1087_v35 = vadd.f32 %v2062_v38, %v1086_v59 }
 0x3f1   : > { %v1501_v60 = vpop.eup %1500  ;;  %v1397_v61 = vmul.f32 -1.442695, %v1087_v35 }
 0x3f2   : > { %v1095_v62 = vadd.f32 1.0, %v1501_v60 }
 0x3f3   : > { %1502 = vpow2.f32 %v1397_v61 }
 0x3f4   : > { %1504 = vrcp.f32 %v1095_v62  ;;  %v1108_v3 = vand.u32 2147483648, %v1095_v62  ;;  %v1106_v37 = vand.u32 2147483647, %v1095_v62  ;;  %vm1102_vm13 = vweird.f32 %v1095_v62 }
 0x3f6   : > { %v1109_v38 = vor.u32 1.1754944e-38, %v1108_v3  ;;  %vm1107_vm15 = vcmp.eq.f32.partialorder %v1106_v37, 8.507059e+37 }
 0x3f9   : > { %v1503_v36 = vpop.eup %1502 }
 0x3fa   : > { %v1505_v63 = vpop.eup %1504  ;;  %v1096_v0 = vadd.f32 1.0, %v1503_v36 }
 0x3fb   : > { %v1098_v1 = vmul.f32 %v1505_v63, %v1095_v62  ;;  %vm1103_vm12 = vweird.f32 %v1505_v63 }
 0x3fc   : > { %1506 = vrcp.f32 %v1096_v0  ;;  %vm1104_vm14 = vmor %vm1102_vm13, %vm1103_vm12  ;;  %v1123_v16 = vand.u32 2147483648, %v1096_v0  ;;  %v1121_v18 = vand.u32 2147483647, %v1096_v0  ;;  %vm1117_vm2 = vweird.f32 %v1096_v0 }
 0x3fd   : > { %v1099_v2 = vsub.f32 1.0, %v1098_v1 }
 0x3fe   : > { %v1124_v20 = vor.u32 1.1754944e-38, %v1123_v16  ;;  %vm1122_vm4 = vcmp.eq.f32.partialorder %v1121_v18, 8.507059e+37 }
 0x3ff   : > { %v1100_v5 = vmul.f32 %v1505_v63, %v1099_v2 }
 0x401   : > { %v1101_v8 = vadd.f32 %v1505_v63, %v1100_v5 }
 0x402   : > { %v1507_v9 = vpop.eup %1506 }
 0x403   : > { %v1105_v12 = vsel %vm1104_vm14, %v1505_v63, %v1101_v8  ;;  %v1113_v13 = vmul.f32 %v1507_v9, %v1096_v0  ;;  %vm1118_vm1 = vweird.f32 %v1507_v9 }
 0x404   : > { %v1110_v14 = vsel %vm1107_vm15, %v1109_v38, %v1105_v12  ;;  %vm1119_vm3 = vmor %vm1117_vm2, %vm1118_vm1 }
 0x405   : > { %1127 = vxpose.xlu2.b32.start [1/2] (short) (narrow) %v1110_v14, 8  ;;  %v1114_v15 = vsub.f32 1.0, %v1113_v13 }
 0x407   : > { %v1115_v17 = vmul.f32 %v1507_v9, %v1114_v15 }
 0x409   : > { %v1116_v19 = vadd.f32 %v1507_v9, %v1115_v17 }
 0x40b   : > { %v1120_v21 = vsel %vm1119_vm3, %v1507_v9, %v1116_v19 }
 0x40c   : > { %v1125_v22 = vsel %vm1122_vm4, %v1124_v20, %v1120_v21 }
 0x40d   : > { %1128 = vxpose.xlu2.b32.end [2/2] (short) (narrow) %v1125_v22, 8 }
 0x453   : > { %v843_v23 = vpop.f32.mrf.mxu0 }
 0x454   : > { %v855_v24 = vmul.f32 %v843_v23, %v1841_v4 }
 0x456   : > { %859 = vst [vmem:[%s2115_s25] sm:$0xff] %v855_v24 }
 0x45b   : > { %v846_v25 = vpop.f32.mrf.mxu0 }
 0x45c   : > { %v856_v26 = vmul.f32 %v846_v25, %v1849_v6 }
 0x45e   : > { %860 = vst [vmem:[%s2115_s25 + $0x8] sm:$0xff] %v856_v26 }
 0x463   : > { %v849_v28 = vpop.f32.mrf.mxu0 }
 0x464   : > { %v857_v29 = vmul.f32 %v849_v28, %v1852_v7  ;;  %v1049_v7 = vadd.f32 %v2094_v47, %v1048_v32 }
 0x466   : > { %861 = vst [vmem:[%s2115_s25 + $0x10] sm:$0xff] %v857_v29 }
 0x46b   : > { %v852_v30 = vpop.f32.mrf.mxu0 }
 0x46c   : > { %v858_v31 = vmul.f32 %v852_v30, %v1863_v10  ;;  %v1052_v10 = vadd.f32 %v2094_v47, %v1051_v33 }
 0x46e   : > { %862 = vst [vmem:[%s2115_s25 + $0x18] sm:$0xff] %v858_v31 }
 0x49e   : > { %v1143_v4 = vpop.trf.xlu2 }
 0x49f   : > { %1398 = vmatmul.msk.f32.vlgmr.msrb.gmra.mxu2 %vm789_vm11, %v1143_v4 }
 0x522   : > { %v1179_v41 = vpop.f32.mrf.mxu2 }
 0x523   : > { %v1182_v6 = vmul.f32 %v1179_v41, %v1916_v27 }
 0x525   : > { %1210 = vmatpush.msrb.mxu0 %v1182_v6 }
 0x526   : > { %1399 = vmatmul.msk.f32.vlgmr.msrb.gmra.mxu0 %vm575_vm0, %v1049_v7 }
 0x52e   : > { %1400 = vmatmul.msk.f32.gmra.mxu0 %vm575_vm0, %v1052_v10 }
 0x536   : > { %1401 = vmatmul.msk.f32.gmra.mxu0 %vm575_vm0, %v1055_v42 }
 0x53e   : > { %1402 = vmatmul.msk.f32.gmra.mxu0 %vm575_vm0, %v1058_v43 }
 0x5a3   : > { %v1212_v27 = vpop.f32.mrf.mxu0 }
 0x5a4   : > { %v1224_v44 = vmul.f32 %v2007_v50, %v1212_v27 }
 0x5a6   : > { %1403 = vst [vmem:[%s2115_s25 + $0x20] sm:$0xff] %v1224_v44 }
 0x5ab   : > { %v1215_v45 = vpop.f32.mrf.mxu0 }
 0x5ac   : > { %v1225_v46 = vmul.f32 %v2012_v52, %v1215_v45 }
 0x5ae   : > { %1404 = vst [vmem:[%s2115_s25 + $0x28] sm:$0xff] %v1225_v46 }
 0x5b3   : > { %v1218_v48 = vpop.f32.mrf.mxu0 }
 0x5b4   : > { %v1226_v49 = vmul.f32 %v2019_v56, %v1218_v48 }
 0x5b6   : > { %1405 = vst [vmem:[%s2115_s25 + $0x30] sm:$0xff] %v1226_v49 }
 0x5bb   : > { %v1221_v50 = vpop.f32.mrf.mxu0 }
 0x5bc   : > { %v1227_v47 = vmul.f32 %v2024_v58, %v1221_v50 }
 0x5be   : > { %1406 = vst [vmem:[%s2115_s25 + $0x38] sm:$0xff] %v1227_v47 }
 0x5bf   : > { %1625 = shalt.err (!%p1622_p8)
}
 0x5c0   : > { %s1673_s22 = smov 128   ;;  %s1674_s25 = smov 8  }
 0x5c1   : > { %1428 = dma.vmem_to_hbm [thread:$0]  (%p1773_p5), %s1248_s19, 1024, %s1250_s6, %s1234_s29, %s1673_s22, %s1673_s22, %s1674_s25  }
 0x5c2 PF: > { %p1450_p9 = scmp.ge.s32.totalorder %s1668_s20, 2  ;;  %s1264_s14 = sand.u32 1, %s1656_s17  }
 0x5c3   : > { %s1265_s26 = scalar_lea.sflag [#allocation4], %s1264_s14 }
 0x5c4   : > { %p1441_p10 = pnand %p1450_p9, %p1777_p6 }
 0x5c6   : > { %p1442_p11 = pneg %p1441_p10 }
 0x5c8   : > { %1651 = dma.done.wait (%p1442_p11), %s1265_s26, 1024  }
 0x5c9   : > { %1653 = vsyncadd (%p1442_p11), %s1265_s26, 4294966272  ;;  %s2196_s21 = sld [smem:[#allocation12_spill]]  ;;  %p23_p12 = scmp.ge.s32.totalorder %s1760_s23, 6  }
 0x5ca   : > { %s2197_s19 = sld [smem:[#allocation13_spill]]  ;;  %s2198_s17 = smov %s1660_s18 }
 0x5cb   : > { %s2200_s20 = smov %s1760_s23  ;;  %25 = sbr.rel (!%p23_p12) target bundleno = 7 (0x7), region = 114 }
 0x5cf   : > { %s2199_s18 = smov %s2196_s21 }
 0x5d0   :  { %1271 = vsyncpa [#allocation3], 1 }
 0x5d1   :  { %1273 = vsyncpa [#allocation3 + $0x1], 1 }
 0x5d2   :  { %1274 = vsyncpa [#allocation6], 1 }
 0x5d3   :  { %1275 = vsyncpa [#allocation4], 1 }
 0x5d4   :  { %1277 = vsyncpa [#allocation4 + $0x1], 1 }

// kernel: tpu_custom_call.1
= control target key start
LH: loop header
LB: loop body
LE: loop exit
PB: predicated region body
PF: predicated region fallthrough
CT: control target
= control target key end

     0   :  { %s2176_s0 = inlined_call_operand.vmem [shape: f32[8,32,128], index: 0, kind: input, shape index: {}]   ;;  %s2177_s1 = inlined_call_operand.vmem [shape: f32[128,8], index: 1, kind: input, shape index: {}]   ;;  %s2178_s2 = inlined_call_operand.hbm [shape: f32[8,128], index: 2, kind: input, shape index: {}]   ;;  %s2179_s3 = inlined_call_operand.vmem [shape: f32[128,16], index: 3, kind: input, shape index: {}]   ;;  %s2180_s4 = inlined_call_operand.vmem [shape: f32[16,128], index: 4, kind: input, shape index: {}]   ;;  %s2181_s5 = inlined_call_operand.vmem [shape: f32[8,4], index: 5, kind: input, shape index: {}]   ;;  %s2182_s6 = inlined_call_operand.hbm [shape: f32[1,4], index: 6, kind: input, shape index: {}]   ;;  %s2183_s7 = inlined_call_operand.vmem [shape: f32[4,8], index: 7, kind: input, shape index: {}]   ;;  %s2184_s8 = inlined_call_operand.vmem [shape: f32[1,8], index: 8, kind: input, shape index: {}]   ;;  %s2185_s9 = inlined_call_operand.hbm [shape: f32[4,8], index: 9, kind: input, shape index: {}]   ;;  %s2186_s10 = inlined_call_operand.vmem [shape: f32[1,8], index: 10, kind: input, shape index: {}]   ;;  %s2187_s11 = inlined_call_operand.hbm [shape: f32[8,32,128], index: 11, kind: output, shape index: {}]  }
   0x1   :  { %2189 = sst [smem:[#allocation14_spill]] %s2182_s6 }
   0x2   :  { %16 = vsyncpa [#allocation3], 0 }
   0x3   :  { %17 = vsyncpa [#allocation6], 0 }
   0x4   :  { %18 = vsyncpa [#allocation4], 0 }
   0x5   :  { %20 = vsyncpa [#allocation4 + $0x1], 0  ;;  %s1735_s17 = smov 0   ;;  %s1737_s18 = smov 0  }
   0x6   :  { %s1739_s19 = smov 0   ;;  %s1741_s20 = smov 0  }
   0x7 LB: > { %2190 = sst [smem:[#allocation12_spill]] %s1664_s19  ;;  %s1756_s21 = sadd.s32 4294967295, %s1668_s20   ;;  %s1668_s20 = sphi %s1741_s20, %s2200_s20   ;;  %s1664_s19 = sphi %s1739_s19, %s2197_s19   ;;  %s1660_s18 = sphi %s1737_s18, %s2199_s18   ;;  %s1656_s17 = sphi %s1735_s17, %s2198_s17  }
   0x8   : > { %s1343_s22 = sadd.s32 4294967294, %s1668_s20   ;;  %s1760_s23 = sadd.s32 1, %s1668_s20  }
   0x9   : > { %s269_s24 = sadd.s32 1, %s1664_s19  ;;  %s266_s25 = ssub.s32 %s1668_s20, %s1760_s23 }
   0xa   : > { %p279_p0 = scmp.ne.s32.totalorder %s1664_s19, %s1660_s18  ;;  %p267_p1 = scmp.eq.s32.totalorder %s266_s25, 0 }
   0xb   : > { %p280_p2 = scmp.eq.s32.totalorder %s1756_s21, 3  ;;  %p285_p3 = scmp.ne.s32.totalorder %s1660_s18, %s1656_s17 }
   0xc   : > { %p286_p4 = scmp.eq.s32.totalorder %s1343_s22, 3  ;;  %p1344_p7 = scmp.ge.s32.totalorder %s1668_s20, 1 }
   0xd   : > { %s1771_s26 = scalar_select %p267_p1, %s1664_s19, %s269_s24  }
   0xe   : > { %p1773_p5 = por %p280_p2, %p279_p0  ;;  %p1777_p6 = por %p286_p4, %p285_p3 }
   0xf   : > { %2191 = sst [smem:[#allocation13_spill]] %s1771_s26  ;;  %p293_p8 = scmp.lt.s32.totalorder %s1668_s20, 5 }
  0x10   : > { %p1444_p9 = scmp.eq.s32.totalorder %s1756_s21, 0  ;;  %s2195_s6 = sld [smem:[#allocation14_spill]] }
  0x11   : > { %p1784_p10 = pnand %p1344_p7, %p293_p8  ;;  %s1670_s14 = smov [#allocation5]  }
  0x12   : > { %s331_s15 = sshll.u32 %s1670_s14, 4  ;;  %s308_s24 = sshll.u32 %s2178_s2, 4  ;;  %s332_s15 = int_to_ptr.vmem [resolvable:$true] %s331_s15  ;;  %s309_s24 = int_to_ptr.hbm [resolvable:$true] %s308_s24 }
  0x13   : > { %p1430_p11 = pneg %p1784_p10  ;;  %s347_s19 = sshll.u32 %s2185_s9, 4  ;;  %s348_s19 = int_to_ptr.hbm [resolvable:$true] %s347_s19 }
  0x14   : > { %s1671_s30 = smov [#allocation2]  }
  0x15   : > { %p1431_p12 = pnand %p1444_p9, %p1430_p11  ;;  %s310_s12 = sshll.u32 %s1671_s30, 4  ;;  %s311_s12 = int_to_ptr.vmem [resolvable:$true] %s310_s12 }
  0x16   : > { %s329_s13 = sshll.u32 %s2195_s6, 4  ;;  %s1672_s6 = smov [#allocation7]   ;;  %s330_s13 = int_to_ptr.hbm [resolvable:$true] %s329_s13 }
  0x17   : > { %1436 = dma.hbm_to_vmem [thread:$0]  (!%p1431_p12), %s330_s13, 16, %s332_s15, [#allocation6]  }
  0x18   : > { %1433 = dma.hbm_to_vmem [thread:$0]  (!%p1431_p12), %s309_s24, 128, %s311_s12, [#allocation3]  }
  0x19   : > { %s349_s14 = sshll.u32 %s1672_s6, 4  ;;  %375 = sbr.rel (%p1784_p10) target bundleno = 1474 (0x5c2), region = 64  ;;  %s350_s14 = int_to_ptr.vmem [resolvable:$true] %s349_s14 }
  0x1a   : > { %1439 = dma.hbm_to_vmem [thread:$0]  (!%p1431_p12), %s348_s19, 64, %s350_s14, [#allocation6]  }
  0x1e   : > { %1643 = dma.done.wait (%p1444_p9), [#allocation3], 128  }
  0x1f   : > { %1645 = vsyncadd (%p1444_p9), [#allocation3], 4294967168 }
  0x20   : > { %1647 = dma.done.wait (%p1444_p9), [#allocation6], 80  }
  0x21   : > { %1649 = vsyncadd (%p1444_p9), [#allocation6], 4294967216  ;;  %s1354_s26 = sshll.u32 %s1756_s21, 1  ;;  %v1815_v0 = vld [vmem:[%s2179_s3 + $0x78] sm:$0xff]  ;;  %v1820_v1 = vld [vmem:[%s2179_s3 + $0x70] sm:$0xff]  ;;  %vm575_vm0 = vcmask 64512  }
  0x22   : > { %p428_p13 = scmp.lt.s32.totalorder %s1354_s26, 7  ;;  %490 = vmatpush.msra.mxu0 %v1815_v0  ;;  %v1826_v2 = vld [vmem:[%s2179_s3 + $0x68] sm:$0xff]  ;;  %v1837_v3 = vld [vmem:[%s2179_s3 + $0x60] sm:$0xff]  ;;  %v1846_v5 = vld [vmem:[%s2179_s3 + $0x58] sm:$0xff]  ;;  %vm651_vm1 = vcmask 1043456   ;;  %vm638_vm2 = vcmask 31744  }
  0x23   : > { %v1860_v9 = vld [vmem:[%s2179_s3 + $0x50] sm:$0xff]  ;;  %v1870_v12 = vld [vmem:[%s2179_s3 + $0x48] sm:$0xff]  ;;  %v1877_v14 = vld [vmem:[%s2179_s3 + $0x40] sm:$0xff]  ;;  %vm789_vm11 = vcmask 130048   ;;  %s424_s22 = sand.u32 1, %s1660_s18  }
  0x24   : > { %s2202_s26 = smov (!%p428_p13, %s1354_s26), 7  ;;  %491 = vmatpush.msra.mxu0 %v1820_v1  ;;  %v1883_v16 = vld [vmem:[%s2179_s3 + $0x38] sm:$0xff]  ;;  %v1889_v18 = vld [vmem:[%s2179_s3 + $0x30] sm:$0xff]  ;;  %v1895_v20 = vld [vmem:[%s2179_s3 + $0x28] sm:$0xff]  ;;  %s1353_s24 = sshll.u32 %s424_s22, 6 }
  0x25   : > { %s1413_s6 = sshll.u32 %s2202_s26, 5  ;;  %v1901_v22 = vld [vmem:[%s2179_s3 + $0x20] sm:$0xff]  ;;  %v1907_v24 = vld [vmem:[%s2179_s3 + $0x18] sm:$0xff]  ;;  %v1913_v25 = vld [vmem:[%s2179_s3 + $0x10] sm:$0xff]  ;;  %s2115_s25 = scalar_lea.vmem [#allocation8], %s1353_s24 }
  0x26   : > { %s1831_s30 = scalar_lea.vmem %s2176_s0, %s1413_s6  ;;  %492 = vmatpush.msra.mxu0 %v1826_v2  ;;  %v1916_v27 = vld [vmem:[#allocation2] sm:$0xff]  ;;  %v1921_v28 = vld [vmem:[%s2179_s3 + $0x8] sm:$0xff]  ;;  %v450_v31 = vld [vmem:[%s2177_s1 + $0x78] sm:$0xff]  ;;  %s1247_s19 = sshll.u32 %s2115_s25, 4  ;;  %s1248_s19 = int_to_ptr.vmem [resolvable:$true] %s1247_s19 }
  0x27   : > { %v1841_v4 = vld [vmem:[%s1831_s30] sm:$0xff]  ;;  %v1849_v6 = vld [vmem:[%s1831_s30 + $0x8] sm:$0xff]  ;;  %v1852_v7 = vld [vmem:[%s1831_s30 + $0x10] sm:$0xff]  ;;  %511 = vmatpush.msra.mxu1 %v450_v31  ;;  %s1234_s29 = scalar_lea.sflag [#allocation4], %s424_s22  ;;  %s1618_s24 = scalar_lea.hbm %s2187_s11, 256 }
  0x28   : > { %493 = vmatpush.msra.mxu0 %v1837_v3  ;;  %v480_v8 = vadd.f32 %v1849_v6, %v1841_v4  ;;  %v1863_v10 = vld [vmem:[%s1831_s30 + $0x18] sm:$0xff]  ;;  %v1927_v29 = vld [vmem:[%s2179_s3] sm:$0xff]  ;;  %v449_v32 = vld [vmem:[%s2177_s1 + $0x70] sm:$0xff] }
  0x29   : > { %v448_v33 = vld [vmem:[%s2177_s1 + $0x68] sm:$0xff]  ;;  %512 = vmatpush.msra.mxu1 %v449_v32  ;;  %v447_v34 = vld [vmem:[%s2177_s1 + $0x60] sm:$0xff]  ;;  %v446_v35 = vld [vmem:[%s2177_s1 + $0x58] sm:$0xff] }
  0x2a   : > { %494 = vmatpush.msra.mxu0 %v1846_v5  ;;  %v481_v11 = vadd.f32 %v480_v8, %v1852_v7  ;;  %v445_v36 = vld [vmem:[%s2177_s1 + $0x50] sm:$0xff]  ;;  %v444_v37 = vld [vmem:[%s2177_s1 + $0x48] sm:$0xff]  ;;  %v443_v38 = vld [vmem:[%s2177_s1 + $0x40] sm:$0xff] }
  0x2b   : > { %513 = vmatpush.msra.mxu1 %v448_v33  ;;  %v442_v39 = vld [vmem:[%s2177_s1 + $0x38] sm:$0xff]  ;;  %v441_v40 = vld [vmem:[%s2177_s1 + $0x30] sm:$0xff]  ;;  %v440_v41 = vld [vmem:[%s2177_s1 + $0x28] sm:$0xff] }
  0x2c   : > { %495 = vmatpush.msra.mxu0 %v1860_v9  ;;  %v482_v13 = vadd.f32 %v481_v11, %v1863_v10  ;;  %v439_v42 = vld [vmem:[%s2177_s1 + $0x20] sm:$0xff]  ;;  %v438_v43 = vld [vmem:[%s2177_s1 + $0x18] sm:$0xff]  ;;  %v437_v44 = vld [vmem:[%s2177_s1 + $0x10] sm:$0xff] }
  0x2d   : > { %514 = vmatpush.msra.mxu1 %v447_v34  ;;  %v1977_v45 = vld [vmem:[%s2181_s5] sm:$0xff]  ;;  %v436_v46 = vld [vmem:[%s2177_s1 + $0x8] sm:$0xff]  ;;  %v2019_v56 = vld [vmem:[%s1831_s30 + $0x30] sm:$0xff] }
  0x2e   : > { %496 = vmatpush.msra.mxu0 %v1870_v12  ;;  %v483_v15 = vrot.slane %v482_v13, 4  ;;  %609 = vmatpush.msra.mxu2 %v1977_v45  ;;  %v435_v47 = vld [vmem:[%s2177_s1] sm:$0xff]  ;;  %v2012_v52 = vld [vmem:[%s1831_s30 + $0x28] sm:$0xff]  ;;  %v2024_v58 = vld [vmem:[%s1831_s30 + $0x38] sm:$0xff] }
  0x2f   : > { %515 = vmatpush.msra.mxu1 %v446_v35  ;;  %v2007_v50 = vld [vmem:[%s1831_s30 + $0x20] sm:$0xff]  ;;  %v2036_v11 = vld [vmem:[#allocation5] ss:$0 sm:$0xff]  ;;  %s1415_s30 = sshll.u32 %s1756_s21, 6 }
  0x30   : > { %497 = vmatpush.msra.mxu0 %v1877_v14  ;;  %v484_v17 = vadd.f32 %v483_v15, %v482_v13  ;;  %878 = vmatpush.msrb.mxu2 %v1815_v0  ;;  %v868_v55 = vadd.f32 %v2012_v52, %v2007_v50  ;;  %v474_v15 = vld [vmem:[#allocation7] sm:$0xf]  ;;  %s1246_s26 = scalar_lea.hbm %s2187_s11, %s1415_s30 }
  0x31   : > { %516 = vmatpush.msra.mxu1 %v445_v36  ;;  %s1249_s6 = sshll.u32 %s1246_s26, 4  ;;  %s1250_s6 = int_to_ptr.hbm [resolvable:$true] %s1249_s6 }
  0x32   : > { %498 = vmatpush.msra.mxu0 %v1883_v16  ;;  %v485_v19 = vrot.slane %v484_v17, 2  ;;  %879 = vmatpush.msrb.mxu2 %v1820_v1  ;;  %v869_v57 = vadd.f32 %v2019_v56, %v868_v55  ;;  %s1612_s21 = sshra.s32 %s1250_s6, 4  ;;  %s1613_s21 = int_to_ptr.hbm [resolvable:$true] %s1612_s21 }
  0x33   : > { %517 = vmatpush.msra.mxu1 %v444_v37  ;;  %s1614_s13 = scalar_lea.hbm %s1613_s21, 64  ;;  %p1619_p3 = scmp.lt.s32.totalorder %s1613_s21, %s2187_s11 }
  0x34   : > { %499 = vmatpush.msra.mxu0 %v1889_v18  ;;  %v486_v21 = vadd.f32 %v485_v19, %v484_v17  ;;  %880 = vmatpush.msrb.mxu2 %v1826_v2  ;;  %v870_v59 = vadd.f32 %v2024_v58, %v869_v57  ;;  %p1615_p0 = scmp.ne.s32.totalorder %s1613_s21, %s1614_s13  ;;  %p1620_p4 = scmp.lt.s32.totalorder %s1618_s24, %s1614_s13 }
  0x35   : > { %518 = vmatpush.msra.mxu1 %v443_v38 }
  0x36   : > { %500 = vmatpush.msra.mxu0 %v1895_v20  ;;  %v487_v23 = vrot.slane %v486_v21, 1  ;;  %881 = vmatpush.msrb.mxu2 %v1837_v3  ;;  %v871_v61 = vrot.slane %v870_v59, 4  ;;  %p1616_p1 = pnand %p1615_p0, %p1773_p5  ;;  %p1621_p7 = por %p1620_p4, %p1619_p3 }
  0x37   : > { %519 = vmatpush.msra.mxu1 %v442_v39 }
  0x38   : > { %501 = vmatpush.msra.mxu0 %v1901_v22  ;;  %v488_v26 = vadd.f32 %v487_v23, %v486_v21  ;;  %882 = vmatpush.msrb.mxu2 %v1846_v5  ;;  %v872_v62 = vadd.f32 %v871_v61, %v870_v59  ;;  %p1617_p2 = pneg %p1616_p1 }
  0x39   : > { %520 = vmatpush.msra.mxu1 %v441_v40 }
  0x3a   : > { %502 = vmatpush.msra.mxu0 %v1907_v24  ;;  %v489_v30 = vmul.f32 %v488_v26, %v1916_v27  ;;  %883 = vmatpush.msrb.mxu2 %v1860_v9  ;;  %v873_v0 = vrot.slane %v872_v62, 2  ;;  %v472_v9 = vld [vmem:[%s2183_s7] sm:$0xf]  ;;  %p1622_p8 = pnand %p1621_p7, %p1617_p2 }
  0x3b   : > { %521 = vmatpush.msra.mxu1 %v440_v41  ;;  %1363 = vmatpush.msk.msra.mxu3 %vm651_vm1, %v472_v9 }
  0x3c   : > { %503 = vmatpush.msra.mxu0 %v1913_v25  ;;  %884 = vmatpush.msrb.mxu2 %v1870_v12  ;;  %v874_v1 = vadd.f32 %v873_v0, %v872_v62 }
  0x3d   : > { %522 = vmatpush.msra.mxu1 %v439_v42  ;;  %1368 = vmatpush.msk.msrb.mxu3 %vm651_vm1, %v474_v15 }
  0x3e   : > { %504 = vmatpush.msra.mxu0 %v1921_v28  ;;  %885 = vmatpush.msrb.mxu2 %v1877_v14  ;;  %v875_v2 = vrot.slane %v874_v1, 1 }
  0x3f   : > { %523 = vmatpush.msra.mxu1 %v438_v43 }
  0x40   : > { %505 = vmatpush.msra.mxu0 %v1927_v29  ;;  %886 = vmatpush.msrb.mxu2 %v1883_v16  ;;  %v876_v5 = vadd.f32 %v875_v2, %v874_v1 }
  0x41   : > { %506 = vmatmul.f32.vlgmr.msra.gmra.mxu0 %v489_v30  ;;  %524 = vmatpush.msra.mxu1 %v437_v44 }
  0x42   : > { %887 = vmatpush.msrb.mxu2 %v1889_v18  ;;  %v877_v8 = vmul.f32 %v876_v5, %v1916_v27 }
  0x43   : > { %525 = vmatpush.msra.mxu1 %v436_v46 }
  0x44   : > { %888 = vmatpush.msrb.mxu2 %v1895_v20 }
  0x45   : > { %526 = vmatpush.msra.mxu1 %v435_v47 }
  0x46   : > { %527 = vmatmul.f32.vlgmr.msra.gmra.mxu1 %v1841_v4  ;;  %889 = vmatpush.msrb.mxu2 %v1901_v22 }
  0x47   : > { %899 = vmatpush.msrb.mxu1 %v450_v31 }
  0x48   : > { %890 = vmatpush.msrb.mxu2 %v1907_v24 }
  0x49   : > { %900 = vmatpush.msrb.mxu1 %v449_v32 }
  0x4a   : > { %891 = vmatpush.msrb.mxu2 %v1913_v25 }
  0x4b   : > { %901 = vmatpush.msrb.mxu1 %v448_v33 }
  0x4c   : > { %892 = vmatpush.msrb.mxu2 %v1921_v28 }
  0x4d   : > { %902 = vmatpush.msrb.mxu1 %v447_v34 }
  0x4e   : > { %530 = vmatmul.f32.gmra.mxu1 %v1849_v6  ;;  %893 = vmatpush.msrb.mxu2 %v1927_v29 }
  0x4f   : > { %903 = vmatpush.msrb.mxu1 %v446_v35 }
  0x51   : > { %904 = vmatpush.msrb.mxu1 %v445_v36 }
  0x53   : > { %905 = vmatpush.msrb.mxu1 %v444_v37 }
  0x55   : > { %906 = vmatpush.msrb.mxu1 %v443_v38  ;;  %v2062_v38 = vld [vmem:[%s2186_s10] ss:$0 sm:$0xff] }
  0x56   : > { %533 = vmatmul.f32.gmra.mxu1 %v1852_v7 }
  0x57   : > { %907 = vmatpush.msrb.mxu1 %v442_v39 }
  0x59   : > { %908 = vmatpush.msrb.mxu1 %v441_v40 }
  0x5b   : > { %909 = vmatpush.msrb.mxu1 %v440_v41 }
  0x5d   : > { %910 = vmatpush.msrb.mxu1 %v439_v42 }
  0x5e   : > { %536 = vmatmul.f32.gmra.mxu1 %v1863_v10 }
  0x5f   : > { %911 = vmatpush.msrb.mxu1 %v438_v43 }
  0x61   : > { %912 = vmatpush.msrb.mxu1 %v437_v44 }
  0x63   : > { %913 = vmatpush.msrb.mxu1 %v436_v46 }
  0x65   : > { %914 = vmatpush.msrb.mxu1 %v435_v47 }
  0x66   : > { %915 = vmatmul.f32.vlgmr.msrb.gmra.mxu1 %v2007_v50 }
  0x67   : > { %1393 = vmatpush.msk.msra.mxu1 %vm651_vm1, %v474_v15 }
  0x6e   : > { %918 = vmatmul.f32.gmra.mxu1 %v2012_v52 }
  0x76   : > { %921 = vmatmul.f32.gmra.mxu1 %v2019_v56 }
  0x7e   : > { %924 = vmatmul.f32.gmra.mxu1 %v2024_v58 }
  0xbe   : > { %v507_v48 = vpop.f32.mrf.mxu0 }
  0xbf   : > { %v510_v49 = vmul.f32 0.03125, %v507_v48 }
  0xc1   : > { %540 = vxpose.xlu0.b32.start.end [1/1] (short) (narrow) %v510_v49, 16 }
  0xc3   : > { %v528_v54 = vpop.f32.mrf.mxu1 }
  0xcb   : > { %v531_v60 = vpop.f32.mrf.mxu1 }
  0xd3   : > { %v534_v63 = vpop.f32.mrf.mxu1 }
  0xdb   : > { %v537_v3 = vpop.f32.mrf.mxu1 }
 0x165   : > { %v556_v51 = vpop.trf.xlu0 }
 0x166   : > { %1357 = vmatmul.msk.f32.vlgmr.msra.gmra.mxu2 %vm575_vm0, %v556_v51 }
 0x167   : > { %1388 = vmatpush.msk.msra.mxu2 %vm651_vm1, %v472_v9 }
 0x16d   : > { %v557_v53 = vpop.trf.xlu0 }
 0x16e   : > { %1358 = vmatmul.msk.f32.gmra.mxu2 %vm575_vm0, %v557_v53 }
 0x176   : > { %1359 = vmatmul.msk.f32.gmra.mxu2 %vm575_vm0, %v528_v54 }
 0x17e   : > { %1360 = vmatmul.msk.f32.gmra.mxu2 %vm575_vm0, %v531_v60 }
 0x186   : > { %1361 = vmatmul.msk.f32.gmra.mxu2 %vm575_vm0, %v534_v63 }
 0x18e   : > { %1362 = vmatmul.msk.f32.gmra.mxu2 %vm575_vm0, %v537_v3 }
 0x196   : > { %894 = vmatmul.f32.vlgmr.msrb.gmra.mxu2 %v877_v8 }
 0x1e9   : > { %v611_v12 = vpop.f32.mrf.mxu2 }
 0x1ea   : > { %v612_v13 = vadd.f32 %v2036_v11, %v611_v12 }
 0x1ec   : > { %v629_v14 = vmax.f32 %v612_v13, 0.0 }
 0x1ee   : > { %1364 = vmatmul.msk.f32.vlgmr.msra.gmra.mxu3 %vm638_vm2, %v629_v14 }
 0x1ef   : > { %993 = vmatpush.msra.mxu3 %v1977_v45 }
 0x1f1   : > { %v614_v16 = vpop.f32.mrf.mxu2 }
 0x1f2   : > { %v615_v17 = vadd.f32 %v2036_v11, %v614_v16  ;;  %v916_v16 = vpop.f32.mrf.mxu1 }
 0x1f4   : > { %v630_v18 = vmax.f32 %v615_v17, 0.0 }
 0x1f6   : > { %1365 = vmatmul.msk.f32.gmra.mxu3 %vm638_vm2, %v630_v18 }
 0x1f9   : > { %v617_v19 = vpop.f32.mrf.mxu2 }
 0x1fa   : > { %v618_v20 = vadd.f32 %v2036_v11, %v617_v19  ;;  %v919_v17 = vpop.f32.mrf.mxu1 }
 0x1fc   : > { %v631_v21 = vmax.f32 %v618_v20, 0.0  ;;  %v469_v20 = vld [vmem:[%s2180_s4 + $0x8] sm:$0xff] }
 0x1fd   : > { %807 = vmatpush.msrb.mxu0 %v469_v20  ;;  %1176 = vmatpush.msrb.mxu2 %v469_v20 }
 0x1fe   : > { %1366 = vmatmul.msk.f32.gmra.mxu3 %vm638_vm2, %v631_v21  ;;  %v468_v21 = vld [vmem:[%s2180_s4] sm:$0xff] }
 0x1ff   : > { %808 = vmatpush.msrb.mxu0 %v468_v21  ;;  %1177 = vmatpush.msrb.mxu2 %v468_v21 }
 0x201   : > { %v620_v22 = vpop.f32.mrf.mxu2 }
 0x202   : > { %v621_v23 = vadd.f32 %v2036_v11, %v620_v22  ;;  %v922_v18 = vpop.f32.mrf.mxu1 }
 0x204   : > { %v632_v24 = vmax.f32 %v621_v23, 0.0 }
 0x206   : > { %1367 = vmatmul.msk.f32.gmra.mxu3 %vm638_vm2, %v632_v24 }
 0x209   : > { %v623_v25 = vpop.f32.mrf.mxu2 }
 0x20a   : > { %v624_v26 = vadd.f32 %v2036_v11, %v623_v25  ;;  %v925_v19 = vpop.f32.mrf.mxu1 }
 0x20c   : > { %v633_v28 = vmax.f32 %v624_v26, 0.0 }
 0x20e   : > { %1369 = vmatmul.msk.f32.vlgmr.msrb.gmra.mxu3 %vm638_vm2, %v633_v28 }
 0x211   : > { %v626_v29 = vpop.f32.mrf.mxu2 }
 0x212   : > { %v627_v30 = vadd.f32 %v2036_v11, %v626_v29 }
 0x214   : > { %v634_v31 = vmax.f32 %v627_v30, 0.0 }
 0x216   : > { %1370 = vmatmul.msk.f32.gmra.mxu3 %vm638_vm2, %v634_v31 }
 0x219   : > { %v895_v32 = vpop.f32.mrf.mxu2 }
 0x21a   : > { %v898_v33 = vmul.f32 0.03125, %v895_v32 }
 0x21c   : > { %928 = vxpose.xlu0.b32.start.end [1/1] (short) (narrow) %v898_v33, 16 }
 0x271   : > { %v2051_v34 = vpop.f32.mrf.mxu3 }
 0x279   : > { %v2053_v35 = vpop.f32.mrf.mxu3 }
 0x281   : > { %v2055_v36 = vpop.f32.mrf.mxu3 }
 0x289   : > { %v2057_v37 = vpop.f32.mrf.mxu3 }
 0x291   : > { %v713_v39 = vpop.f32.mrf.mxu3 }
 0x292   : > { %v714_v40 = vadd.f32 %v2062_v38, %v713_v39 }
 0x294   : > { %v1371_v41 = vmul.f32 -1.442695, %v714_v40 }
 0x296   : > { %1492 = vpow2.f32 %v1371_v41 }
 0x299   : > { %v716_v42 = vpop.f32.mrf.mxu3 }
 0x29a   : > { %v717_v43 = vadd.f32 %v2062_v38, %v716_v42 }
 0x29c   : > { %v1493_v44 = vpop.eup %1492  ;;  %v1372_v45 = vmul.f32 -1.442695, %v717_v43 }
 0x29d   : > { %v725_v46 = vadd.f32 1.0, %v1493_v44 }
 0x29e   : > { %1494 = vpow2.f32 %v1372_v45 }
 0x29f   : > { %1496 = vrcp.f32 %v725_v46  ;;  %v738_v54 = vand.u32 2147483648, %v725_v46  ;;  %v736_v57 = vand.u32 2147483647, %v725_v46  ;;  %vm732_vm4 = vweird.f32 %v725_v46 }
 0x2a1   : > { %v739_v61 = vor.u32 1.1754944e-38, %v738_v54  ;;  %vm737_vm6 = vcmp.eq.f32.partialorder %v736_v57, 8.507059e+37 }
 0x2a4   : > { %v1495_v47 = vpop.eup %1494 }
 0x2a5   : > { %v1497_v48 = vpop.eup %1496  ;;  %v726_v49 = vadd.f32 1.0, %v1495_v47  ;;  %v2094_v47 = vld [vmem:[%s2184_s8] ss:$0 sm:$0xff] }
 0x2a6   : > { %v728_v51 = vmul.f32 %v1497_v48, %v725_v46  ;;  %vm733_vm3 = vweird.f32 %v1497_v48 }
 0x2a7   : > { %1498 = vrcp.f32 %v726_v49  ;;  %vm734_vm5 = vmor %vm732_vm4, %vm733_vm3  ;;  %v753_v2 = vand.u32 2147483648, %v726_v49  ;;  %v751_v5 = vand.u32 2147483647, %v726_v49  ;;  %vm747_vm8 = vweird.f32 %v726_v49 }
 0x2a8   : > { %v729_v53 = vsub.f32 1.0, %v728_v51  ;;  %v673_v51 = vadd.f32 %v2094_v47, %v2051_v34  ;;  %v682_v34 = vadd.f32 %v2094_v47, %v2057_v37 }
 0x2a9   : > { %v754_v9 = vor.u32 1.1754944e-38, %v753_v2  ;;  %vm752_vm10 = vcmp.eq.f32.partialorder %v751_v5, 8.507059e+37 }
 0x2aa   : > { %v730_v55 = vmul.f32 %v1497_v48, %v729_v53  ;;  %v679_v53 = vadd.f32 %v2094_v47, %v2055_v36 }
 0x2ac   : > { %v731_v59 = vadd.f32 %v1497_v48, %v730_v55 }
 0x2ad   : > { %v1499_v60 = vpop.eup %1498 }
 0x2ae   : > { %v735_v62 = vsel %vm734_vm5, %v1497_v48, %v731_v59  ;;  %v743_v63 = vmul.f32 %v1499_v60, %v726_v49  ;;  %vm748_vm7 = vweird.f32 %v1499_v60 }
 0x2af   : > { %v740_v0 = vsel %vm737_vm6, %v739_v61, %v735_v62  ;;  %vm749_vm9 = vmor %vm747_vm8, %vm748_vm7 }
 0x2b0   : > { %757 = vxpose.xlu1.b32.start [1/2] (short) (narrow) %v740_v0, 8  ;;  %v744_v1 = vsub.f32 1.0, %v743_v63 }
 0x2b2   : > { %v745_v3 = vmul.f32 %v1499_v60, %v744_v1 }
 0x2b4   : > { %v746_v8 = vadd.f32 %v1499_v60, %v745_v3 }
 0x2b6   : > { %v750_v12 = vsel %vm749_vm9, %v1499_v60, %v746_v8 }
 0x2b7   : > { %v755_v13 = vsel %vm752_vm10, %v754_v9, %v750_v12 }
 0x2b8   : > { %758 = vxpose.xlu1.b32.end [2/2] (short) (narrow) %v755_v13, 8 }
 0x2c0   : > { %v944_v14 = vpop.trf.xlu0 }
 0x2c1   : > { %1382 = vmatmul.msk.f32.vlgmr.msra.gmra.mxu3 %vm575_vm0, %v944_v14 }
 0x2c8   : > { %v945_v15 = vpop.trf.xlu0 }
 0x2c9   : > { %1383 = vmatmul.msk.f32.gmra.mxu3 %vm575_vm0, %v945_v15 }
 0x2d1   : > { %1384 = vmatmul.msk.f32.gmra.mxu3 %vm575_vm0, %v916_v16 }
 0x2d9   : > { %1385 = vmatmul.msk.f32.gmra.mxu3 %vm575_vm0, %v919_v17 }
 0x2e1   : > { %1386 = vmatmul.msk.f32.gmra.mxu3 %vm575_vm0, %v922_v18 }
 0x2e9   : > { %1387 = vmatmul.msk.f32.gmra.mxu3 %vm575_vm0, %v925_v19 }
 0x344   : > { %v995_v22 = vpop.f32.mrf.mxu3 }
 0x345   : > { %v996_v23 = vadd.f32 %v2036_v11, %v995_v22 }
 0x347   : > { %v1013_v24 = vmax.f32 %v996_v23, 0.0 }
 0x349   : > { %1389 = vmatmul.msk.f32.vlgmr.msra.gmra.mxu2 %vm638_vm2, %v1013_v24 }
 0x34c   : > { %v998_v25 = vpop.f32.mrf.mxu3 }
 0x34d   : > { %v999_v26 = vadd.f32 %v2036_v11, %v998_v25 }
 0x34f   : > { %v1014_v28 = vmax.f32 %v999_v26, 0.0 }
 0x351   : > { %1390 = vmatmul.msk.f32.gmra.mxu2 %vm638_vm2, %v1014_v28 }
 0x354   : > { %v1001_v29 = vpop.f32.mrf.mxu3  ;;  %v773_v30 = vpop.trf.xlu1 }
 0x355   : > { %v1002_v31 = vadd.f32 %v2036_v11, %v1001_v29  ;;  %1373 = vmatmul.msk.f32.vlgmr.msrb.gmra.mxu0 %vm789_vm11, %v773_v30 }
 0x357   : > { %v1015_v32 = vmax.f32 %v1002_v31, 0.0 }
 0x359   : > { %1391 = vmatmul.msk.f32.gmra.mxu2 %vm638_vm2, %v1015_v32 }
 0x35c   : > { %v1004_v33 = vpop.f32.mrf.mxu3 }
 0x35d   : > { %v1005_v39 = vadd.f32 %v2036_v11, %v1004_v33 }
 0x35f   : > { %v1016_v40 = vmax.f32 %v1005_v39, 0.0 }
 0x361   : > { %1392 = vmatmul.msk.f32.gmra.mxu2 %vm638_vm2, %v1016_v40 }
 0x364   : > { %v1007_v41 = vpop.f32.mrf.mxu3 }
 0x365   : > { %v1008_v42 = vadd.f32 %v2036_v11, %v1007_v41 }
 0x367   : > { %v1017_v43 = vmax.f32 %v1008_v42, 0.0 }
 0x369   : > { %1394 = vmatmul.msk.f32.vlgmr.msra.gmra.mxu1 %vm638_vm2, %v1017_v43 }
 0x36c   : > { %v1010_v44 = vpop.f32.mrf.mxu3 }
 0x36d   : > { %v1011_v45 = vadd.f32 %v2036_v11, %v1010_v44  ;;  %v676_v11 = vadd.f32 %v2094_v47, %v2053_v35 }
 0x36f   : > { %v1018_v46 = vmax.f32 %v1011_v45, 0.0 }
 0x371   : > { %1395 = vmatmul.msk.f32.gmra.mxu1 %vm638_vm2, %v1018_v46 }
 0x3cc   : > { %v1048_v32 = vpop.f32.mrf.mxu2 }
 0x3d2   : > { %v810_v48 = vpop.f32.mrf.mxu0 }
 0x3d3   : > { %v813_v49 = vmul.f32 %v810_v48, %v1916_v27 }
 0x3d4   : > { %v1051_v33 = vpop.f32.mrf.mxu2 }
 0x3d5   : > { %841 = vmatpush.msra.mxu0 %v813_v49 }
 0x3d6   : > { %1374 = vmatmul.msk.f32.vlgmr.msra.gmra.mxu0 %vm575_vm0, %v673_v51 }
 0x3dc   : > { %v1054_v39 = vpop.f32.mrf.mxu2 }
 0x3dd   : > { %v1055_v42 = vadd.f32 %v2094_v47, %v1054_v39 }
 0x3de   : > { %1375 = vmatmul.msk.f32.gmra.mxu0 %vm575_vm0, %v676_v11 }
 0x3e4   : > { %v1057_v40 = vpop.f32.mrf.mxu2 }
 0x3e5   : > { %v1058_v43 = vadd.f32 %v2094_v47, %v1057_v40 }
 0x3e6   : > { %1376 = vmatmul.msk.f32.gmra.mxu0 %vm575_vm0, %v679_v53  ;;  %v1083_v54 = vpop.f32.mrf.mxu1 }
 0x3e7   : > { %v1084_v55 = vadd.f32 %v2062_v38, %v1083_v54 }
 0x3e9   : > { %v1396_v57 = vmul.f32 -1.442695, %v1084_v55 }
 0x3eb   : > { %1500 = vpow2.f32 %v1396_v57 }
 0x3ee   : > { %1377 = vmatmul.msk.f32.gmra.mxu0 %vm575_vm0, %v682_v34  ;;  %v1086_v59 = vpop.f32.mrf.mxu1 }
 0x3ef   : > { %v1087_v35 = vadd.f32 %v2062_v38, %v1086_v59 }
 0x3f1   : > { %v1501_v60 = vpop.eup %1500  ;;  %v1397_v61 = vmul.f32 -1.442695, %v1087_v35 }
 0x3f2   : > { %v1095_v62 = vadd.f32 1.0, %v1501_v60 }
 0x3f3   : > { %1502 = vpow2.f32 %v1397_v61 }
 0x3f4   : > { %1504 = vrcp.f32 %v1095_v62  ;;  %v1108_v3 = vand.u32 2147483648, %v1095_v62  ;;  %v1106_v37 = vand.u32 2147483647, %v1095_v62  ;;  %vm1102_vm13 = vweird.f32 %v1095_v62 }
 0x3f6   : > { %v1109_v38 = vor.u32 1.1754944e-38, %v1108_v3  ;;  %vm1107_vm15 = vcmp.eq.f32.partialorder %v1106_v37, 8.507059e+37 }
 0x3f9   : > { %v1503_v36 = vpop.eup %1502 }
 0x3fa   : > { %v1505_v63 = vpop.eup %1504  ;;  %v1096_v0 = vadd.f32 1.0, %v1503_v36 }
 0x3fb   : > { %v1098_v1 = vmul.f32 %v1505_v63, %v1095_v62  ;;  %vm1103_vm12 = vweird.f32 %v1505_v63 }
 0x3fc   : > { %1506 = vrcp.f32 %v1096_v0  ;;  %vm1104_vm14 = vmor %vm1102_vm13, %vm1103_vm12  ;;  %v1123_v16 = vand.u32 2147483648, %v1096_v0  ;;  %v1121_v18 = vand.u32 2147483647, %v1096_v0  ;;  %vm1117_vm2 = vweird.f32 %v1096_v0 }
 0x3fd   : > { %v1099_v2 = vsub.f32 1.0, %v1098_v1 }
 0x3fe   : > { %v1124_v20 = vor.u32 1.1754944e-38, %v1123_v16  ;;  %vm1122_vm4 = vcmp.eq.f32.partialorder %v1121_v18, 8.507059e+37 }
 0x3ff   : > { %v1100_v5 = vmul.f32 %v1505_v63, %v1099_v2 }
 0x401   : > { %v1101_v8 = vadd.f32 %v1505_v63, %v1100_v5 }
 0x402   : > { %v1507_v9 = vpop.eup %1506 }
 0x403   : > { %v1105_v12 = vsel %vm1104_vm14, %v1505_v63, %v1101_v8  ;;  %v1113_v13 = vmul.f32 %v1507_v9, %v1096_v0  ;;  %vm1118_vm1 = vweird.f32 %v1507_v9 }
 0x404   : > { %v1110_v14 = vsel %vm1107_vm15, %v1109_v38, %v1105_v12  ;;  %vm1119_vm3 = vmor %vm1117_vm2, %vm1118_vm1 }
 0x405   : > { %1127 = vxpose.xlu2.b32.start [1/2] (short) (narrow) %v1110_v14, 8  ;;  %v1114_v15 = vsub.f32 1.0, %v1113_v13 }
 0x407   : > { %v1115_v17 = vmul.f32 %v1507_v9, %v1114_v15 }
 0x409   : > { %v1116_v19 = vadd.f32 %v1507_v9, %v1115_v17 }
 0x40b   : > { %v1120_v21 = vsel %vm1119_vm3, %v1507_v9, %v1116_v19 }
 0x40c   : > { %v1125_v22 = vsel %vm1122_vm4, %v1124_v20, %v1120_v21 }
 0x40d   : > { %1128 = vxpose.xlu2.b32.end [2/2] (short) (narrow) %v1125_v22, 8 }
 0x453   : > { %v843_v23 = vpop.f32.mrf.mxu0 }
 0x454   : > { %v855_v24 = vmul.f32 %v843_v23, %v1841_v4 }
 0x456   : > { %859 = vst [vmem:[%s2115_s25] sm:$0xff] %v855_v24 }
 0x45b   : > { %v846_v25 = vpop.f32.mrf.mxu0 }
 0x45c   : > { %v856_v26 = vmul.f32 %v846_v25, %v1849_v6 }
 0x45e   : > { %860 = vst [vmem:[%s2115_s25 + $0x8] sm:$0xff] %v856_v26 }
 0x463   : > { %v849_v28 = vpop.f32.mrf.mxu0 }
 0x464   : > { %v857_v29 = vmul.f32 %v849_v28, %v1852_v7  ;;  %v1049_v7 = vadd.f32 %v2094_v47, %v1048_v32 }
 0x466   : > { %861 = vst [vmem:[%s2115_s25 + $0x10] sm:$0xff] %v857_v29 }
 0x46b   : > { %v852_v30 = vpop.f32.mrf.mxu0 }
 0x46c   : > { %v858_v31 = vmul.f32 %v852_v30, %v1863_v10  ;;  %v1052_v10 = vadd.f32 %v2094_v47, %v1051_v33 }
 0x46e   : > { %862 = vst [vmem:[%s2115_s25 + $0x18] sm:$0xff] %v858_v31 }
 0x49e   : > { %v1143_v4 = vpop.trf.xlu2 }
 0x49f   : > { %1398 = vmatmul.msk.f32.vlgmr.msrb.gmra.mxu2 %vm789_vm11, %v1143_v4 }
 0x522   : > { %v1179_v41 = vpop.f32.mrf.mxu2 }
 0x523   : > { %v1182_v6 = vmul.f32 %v1179_v41, %v1916_v27 }
 0x525   : > { %1210 = vmatpush.msrb.mxu0 %v1182_v6 }
 0x526   : > { %1399 = vmatmul.msk.f32.vlgmr.msrb.gmra.mxu0 %vm575_vm0, %v1049_v7 }
 0x52e   : > { %1400 = vmatmul.msk.f32.gmra.mxu0 %vm575_vm0, %v1052_v10 }
 0x536   : > { %1401 = vmatmul.msk.f32.gmra.mxu0 %vm575_vm0, %v1055_v42 }
 0x53e   : > { %1402 = vmatmul.msk.f32.gmra.mxu0 %vm575_vm0, %v1058_v43 }
 0x5a3   : > { %v1212_v27 = vpop.f32.mrf.mxu0 }
 0x5a4   : > { %v1224_v44 = vmul.f32 %v2007_v50, %v1212_v27 }
 0x5a6   : > { %1403 = vst [vmem:[%s2115_s25 + $0x20] sm:$0xff] %v1224_v44 }
 0x5ab   : > { %v1215_v45 = vpop.f32.mrf.mxu0 }
 0x5ac   : > { %v1225_v46 = vmul.f32 %v2012_v52, %v1215_v45 }
 0x5ae   : > { %1404 = vst [vmem:[%s2115_s25 + $0x28] sm:$0xff] %v1225_v46 }
 0x5b3   : > { %v1218_v48 = vpop.f32.mrf.mxu0 }
 0x5b4   : > { %v1226_v49 = vmul.f32 %v2019_v56, %v1218_v48 }
 0x5b6   : > { %1405 = vst [vmem:[%s2115_s25 + $0x30] sm:$0xff] %v1226_v49 }
 0x5bb   : > { %v1221_v50 = vpop.f32.mrf.mxu0 }
 0x5bc   : > { %v1227_v47 = vmul.f32 %v2024_v58, %v1221_v50 }
 0x5be   : > { %1406 = vst [vmem:[%s2115_s25 + $0x38] sm:$0xff] %v1227_v47 }
 0x5bf   : > { %1625 = shalt.err (!%p1622_p8)
}
 0x5c0   : > { %s1673_s22 = smov 128   ;;  %s1674_s25 = smov 8  }
 0x5c1   : > { %1428 = dma.vmem_to_hbm [thread:$0]  (%p1773_p5), %s1248_s19, 1024, %s1250_s6, %s1234_s29, %s1673_s22, %s1673_s22, %s1674_s25  }
 0x5c2 PF: > { %p1450_p9 = scmp.ge.s32.totalorder %s1668_s20, 2  ;;  %s1264_s14 = sand.u32 1, %s1656_s17  }
 0x5c3   : > { %s1265_s26 = scalar_lea.sflag [#allocation4], %s1264_s14 }
 0x5c4   : > { %p1441_p10 = pnand %p1450_p9, %p1777_p6 }
 0x5c6   : > { %p1442_p11 = pneg %p1441_p10 }
 0x5c8   : > { %1651 = dma.done.wait (%p1442_p11), %s1265_s26, 1024  }
 0x5c9   : > { %1653 = vsyncadd (%p1442_p11), %s1265_s26, 4294966272  ;;  %s2196_s21 = sld [smem:[#allocation12_spill]]  ;;  %p23_p12 = scmp.ge.s32.totalorder %s1760_s23, 6  }
 0x5ca   : > { %s2197_s19 = sld [smem:[#allocation13_spill]]  ;;  %s2198_s17 = smov %s1660_s18 }
 0x5cb   : > { %s2200_s20 = smov %s1760_s23  ;;  %25 = sbr.rel (!%p23_p12) target bundleno = 7 (0x7), region = 114 }
 0x5cf   : > { %s2199_s18 = smov %s2196_s21 }
 0x5d0   :  { %1271 = vsyncpa [#allocation3], 1 }
 0x5d1   :  { %1273 = vsyncpa [#allocation3 + $0x1], 1 }
 0x5d2   :  { %1274 = vsyncpa [#allocation6], 1 }
 0x5d3   :  { %1275 = vsyncpa [#allocation4], 1 }
 0x5d4   :  { %1277 = vsyncpa [#allocation4 + $0x1], 1 }

</bundles_post_ra>
